<compile_context>
chip_gen: v5e
topology: v5e:2x2
jax: 0.10.0
libtpu: 0.0.40
codegen_flags: <defaults>
</compile_context>

<pallas_src>
import functools

import jax
import jax.numpy as jnp
from jax.experimental import pallas as pl
from jax.experimental.pallas import tpu as pltpu


def _stable_softplus(z):
    # softplus(z) = max(z, 0) + log1p(exp(-|z|));  log(sigmoid(x)) == -softplus(-x)
    return jnp.maximum(z, 0.0) + jnp.log1p(jnp.exp(-jnp.abs(z)))


def _skipgram_kernel(x_ref, tgt_ref, neg_ref,        # SMEM (scalar prefetch)
                     emb_tbl_ref, out_tbl_ref,       # VMEM-resident weight tables
                     out_ref,                        # (8, 128) per-tile partial sum
                     *, true_b, tb, num_neg):
    tile_start = pl.program_id(0) * tb

    def gather8(tbl_ref, row_ids):
        # 8 dynamic single-row loads from the VMEM table, packed into one
        # (8, D) sublane group so the math below runs on full vreg rows.
        rows = [tbl_ref[pl.ds(r, 1), :] for r in row_ids]
        return jnp.concatenate(rows, axis=0)

    def group_body(g, total):
        base = tile_start + g * 8
        # Clamp tail rows into range; their contribution is masked out below.
        gis = [jnp.minimum(base + j, true_b - 1) for j in range(8)]

        e = gather8(emb_tbl_ref, [x_ref[gi] for gi in gis])            # (8, D)
        t = gather8(out_tbl_ref, [tgt_ref[gi] for gi in gis])          # (8, D)

        # per-row negated loss: softplus(-pos) + sum_k softplus(neg_k)
        loss = _stable_softplus(-jnp.sum(e * t, axis=1, keepdims=True))  # (8, 1)
        for k in range(num_neg):                    # K is small & static
            n = gather8(out_tbl_ref, [neg_ref[k, gi] for gi in gis])
            loss = loss + _stable_softplus(
                jnp.sum(e * n, axis=1, keepdims=True))

        rid = base + jax.lax.broadcasted_iota(jnp.int32, (8, 1), 0)
        loss = jnp.where(rid < true_b, loss, 0.0)
        return total + jnp.sum(loss, axis=0, keepdims=True)             # (1, 1)

    total = jax.lax.fori_loop(0, tb // 8, group_body,
                              jnp.zeros((1, 1), jnp.float32))

    # One dense, lane-aligned (8,128) store per tile: partial sum lives in [0,0].
    r_io = jax.lax.broadcasted_iota(jnp.int32, (8, 128), 0)
    c_io = jax.lax.broadcasted_iota(jnp.int32, (8, 128), 1)
    out_ref[...] = jnp.where((r_io == 0) & (c_io == 0), total, 0.0)


def _choose_batch_tile(B):
    # The tables are VMEM-resident and the indices live in SMEM, so there is
    # no per-tile DMA stream; the tile size only controls grid-step count.
    # Two steps keeps the ~0.35us/step overhead minimal while still letting
    # the "parallel" grid axis shard across both v7x TensorCores.
    half = -(-B // 2)
    return max(8, -(-half // 8) * 8)


def skipgram_loss(emb_table, out_table, x, targets, negatives, *, tb=None):
    """emb_table/out_table: (V, D) f32.  x/targets: (B,) int.  negatives: (B, K) int."""
    V, D = emb_table.shape
    assert out_table.shape == (V, D)
    B = x.shape[0]
    K = negatives.shape[1]
    assert targets.shape == (B,) and negatives.shape == (B, K)

    # Both tables are held VMEM-resident (double-buffered by the pipeline).
    table_vmem = 2 * 2 * V * D * jnp.dtype(emb_table.dtype).itemsize
    if table_vmem > 48 * 1024 * 1024:
        # TODO(synk): DMA-gather path (memory_space=pl.ANY + make_async_copy)
        # for vocabularies whose weight tables do not fit in VMEM.
        raise NotImplementedError("vocab tables too large for VMEM-resident gather")

    if tb is None:
        tb = _choose_batch_tile(B)
    tb = max(8, (int(tb) // 8) * 8)
    n_tiles = pl.cdiv(B, tb)

    x = jnp.asarray(x, jnp.int32)
    targets = jnp.asarray(targets, jnp.int32)
    # (K, B): long axis last so the SMEM copy pads to ~[8, ceil(B/128)*128]
    # words instead of [ceil(B/8)*8, 128].
    neg_kb = jnp.asarray(negatives, jnp.int32).T

    kernel = functools.partial(_skipgram_kernel, true_b=B, tb=tb, num_neg=K)
    vmem_limit = int(min(max(table_vmem + (4 << 20), 16 << 20), 60 << 20))

    per_tile = pl.pallas_call(
        kernel,
        out_shape=jax.ShapeDtypeStruct((n_tiles * 8, 128), jnp.float32),
        grid_spec=pltpu.PrefetchScalarGridSpec(
            num_scalar_prefetch=3,                    # x, targets, negatives -> SMEM
            grid=(n_tiles,),
            in_specs=[
                pl.BlockSpec((V, D), lambda i, *_: (0, 0)),   # embedding table
                pl.BlockSpec((V, D), lambda i, *_: (0, 0)),   # output-weight table
            ],
            out_specs=pl.BlockSpec((8, 128), lambda i, *_: (i, 0)),
        ),
        compiler_params=pltpu.CompilerParams(
            dimension_semantics=("parallel",),
            vmem_limit_bytes=vmem_limit),
    )(x, targets, neg_kb, emb_table, out_table)

    # Only element [0, 0] of each tile block is non-zero (masked partial sum),
    # so a plain sum over the tiny (n_tiles*8, 128) output is the exact total.
    return jnp.sum(per_tile) / B


class SkipGramPallas:
    def __init__(self, vocab_size: int, embedding_dim: int, key):
        k1, k2 = jax.random.split(key)
        # torch.nn.Embedding init ~ N(0,1); nn.Linear weight ~ U(-1/sqrt(D), 1/sqrt(D))
        self.embeddings = jax.random.normal(
            k1, (vocab_size, embedding_dim), dtype=jnp.float32)
        bound = 1.0 / (embedding_dim ** 0.5)
        self.out_weight = jax.random.uniform(
            k2, (vocab_size, embedding_dim), dtype=jnp.float32,
            minval=-bound, maxval=bound)

    def forward(self, x, targets, negatives, tb=None):
        # Fully fused: the integer gathers happen inside the Pallas kernel.
        return skipgram_loss(self.embeddings, self.out_weight,
                             x, targets, negatives, tb=tb)


def _reference(emb_table, out_table, x, targets, negatives):
    emb = emb_table[x]
    tgt_w = out_table[targets]
    neg_w = out_table[negatives]                 # (B, K, D)
    pos = jnp.log(jax.nn.sigmoid(jnp.sum(emb * tgt_w, axis=1)))
    neg = jnp.log(jax.nn.sigmoid(-jnp.sum(emb[:, None, :] * neg_w, axis=2)))
    return -(pos + neg.sum(1)).mean()


if __name__ == "__main__":
    vocab_size = 512
    embedding_dim = 128     # lane-dense last dim; tables fit easily in VMEM
    batch = 200             # not a multiple of the tile -> exercises the mask path
    num_neg = 8

    key = jax.random.PRNGKey(0)
    k_model, k_x, k_t, k_n = jax.random.split(key, 4)

    model = SkipGramPallas(vocab_size, embedding_dim, k_model)

    x = jax.random.randint(k_x, (batch,), 0, vocab_size, dtype=jnp.int32)
    targets = jax.random.randint(k_t, (batch,), 0, vocab_size, dtype=jnp.int32)
    negatives = jax.random.randint(k_n, (batch, num_neg), 0, vocab_size,
                                   dtype=jnp.int32)

    # Auto tile -> grid=(2,) ("parallel"), ragged last tile masked in-kernel.
    loss = model.forward(x, targets, negatives)
    jax.block_until_ready(loss)

    ref = _reference(model.embeddings, model.out_weight, x, targets, negatives)
    assert jnp.allclose(loss, ref, rtol=1e-5, atol=1e-5), (loss, ref)

    print("KERNEL_OK")
</pallas_src>

<mosaic_0001>
module attributes {stable_mosaic.version = 11 : i64} {
  func.func @_skipgram_kernel(%arg0: i32, %arg1: memref<200xi32, #tpu.memory_space<smem>>, %arg2: memref<200xi32, #tpu.memory_space<smem>>, %arg3: memref<8x200xi32, #tpu.memory_space<smem>>, %arg4: memref<512x128xf32, #tpu.memory_space<vmem>>, %arg5: memref<512x128xf32, #tpu.memory_space<vmem>>, %arg6: memref<8x128xf32, #tpu.memory_space<vmem>>) attributes {dimension_semantics = [#tpu.dimension_semantics<parallel>], iteration_bounds = array<i64: 2>, scalar_prefetch = 3 : i64, scratch_operands = 0 : i64, tpu.core_type = #tpu.core_type<tc>, window_params = [{pipeline_mode = #tpu.pipeline_mode<synchronous>, transform_indices = @transform_0, window_bounds = array<i64: 512, 128>}, {pipeline_mode = #tpu.pipeline_mode<synchronous>, transform_indices = @transform_1, window_bounds = array<i64: 512, 128>}, {transform_indices = @transform_2, window_bounds = array<i64: 8, 128>}]} {
    %c104_i32 = arith.constant 104 : i32
    %0 = arith.muli %arg0, %c104_i32 : i32
    %cst = arith.constant 0.000000e+00 : f32
    %1 = vector.broadcast %cst : f32 to vector<1x1xf32>
    %c0_i32 = arith.constant 0 : i32
    %c13_i32 = arith.constant 13 : i32
    %2 = arith.addi %c0_i32, %c13_i32 : i32
    %c1_i32 = arith.constant 1 : i32
    %3 = scf.for %arg7 = %c0_i32 to %2 step %c1_i32 iter_args(%arg8 = %1) -> (vector<1x1xf32>)  : i32 {
      %c8_i32 = arith.constant 8 : i32
      %16 = arith.muli %arg7, %c8_i32 : i32
      %17 = arith.addi %0, %16 : i32
      %c0_i32_5 = arith.constant 0 : i32
      %18 = arith.addi %17, %c0_i32_5 : i32
      %c199_i32 = arith.constant 199 : i32
      %19 = arith.minsi %18, %c199_i32 : i32
      %c1_i32_6 = arith.constant 1 : i32
      %20 = arith.addi %17, %c1_i32_6 : i32
      %c199_i32_7 = arith.constant 199 : i32
      %21 = arith.minsi %20, %c199_i32_7 : i32
      %c2_i32 = arith.constant 2 : i32
      %22 = arith.addi %17, %c2_i32 : i32
      %c199_i32_8 = arith.constant 199 : i32
      %23 = arith.minsi %22, %c199_i32_8 : i32
      %c3_i32 = arith.constant 3 : i32
      %24 = arith.addi %17, %c3_i32 : i32
      %c199_i32_9 = arith.constant 199 : i32
      %25 = arith.minsi %24, %c199_i32_9 : i32
      %c4_i32 = arith.constant 4 : i32
      %26 = arith.addi %17, %c4_i32 : i32
      %c199_i32_10 = arith.constant 199 : i32
      %27 = arith.minsi %26, %c199_i32_10 : i32
      %c5_i32 = arith.constant 5 : i32
      %28 = arith.addi %17, %c5_i32 : i32
      %c199_i32_11 = arith.constant 199 : i32
      %29 = arith.minsi %28, %c199_i32_11 : i32
      %c6_i32 = arith.constant 6 : i32
      %30 = arith.addi %17, %c6_i32 : i32
      %c199_i32_12 = arith.constant 199 : i32
      %31 = arith.minsi %30, %c199_i32_12 : i32
      %c7_i32 = arith.constant 7 : i32
      %32 = arith.addi %17, %c7_i32 : i32
      %c199_i32_13 = arith.constant 199 : i32
      %33 = arith.minsi %32, %c199_i32_13 : i32
      %34 = arith.index_cast %19 : i32 to index
      %35 = memref.load %arg1[%34] : memref<200xi32, #tpu.memory_space<smem>>
      %36 = arith.index_cast %21 : i32 to index
      %37 = memref.load %arg1[%36] : memref<200xi32, #tpu.memory_space<smem>>
      %38 = arith.index_cast %23 : i32 to index
      %39 = memref.load %arg1[%38] : memref<200xi32, #tpu.memory_space<smem>>
      %40 = arith.index_cast %25 : i32 to index
      %41 = memref.load %arg1[%40] : memref<200xi32, #tpu.memory_space<smem>>
      %42 = arith.index_cast %27 : i32 to index
      %43 = memref.load %arg1[%42] : memref<200xi32, #tpu.memory_space<smem>>
      %44 = arith.index_cast %29 : i32 to index
      %45 = memref.load %arg1[%44] : memref<200xi32, #tpu.memory_space<smem>>
      %46 = arith.index_cast %31 : i32 to index
      %47 = memref.load %arg1[%46] : memref<200xi32, #tpu.memory_space<smem>>
      %48 = arith.index_cast %33 : i32 to index
      %49 = memref.load %arg1[%48] : memref<200xi32, #tpu.memory_space<smem>>
      %50 = arith.index_cast %35 : i32 to index
      %c0_14 = arith.constant 0 : index
      %51 = vector.load %arg4[%50, %c0_14] : memref<512x128xf32, #tpu.memory_space<vmem>>, vector<1x128xf32>
      %52 = arith.index_cast %37 : i32 to index
      %c0_15 = arith.constant 0 : index
      %53 = vector.load %arg4[%52, %c0_15] : memref<512x128xf32, #tpu.memory_space<vmem>>, vector<1x128xf32>
      %54 = arith.index_cast %39 : i32 to index
      %c0_16 = arith.constant 0 : index
      %55 = vector.load %arg4[%54, %c0_16] : memref<512x128xf32, #tpu.memory_space<vmem>>, vector<1x128xf32>
      %56 = arith.index_cast %41 : i32 to index
      %c0_17 = arith.constant 0 : index
      %57 = vector.load %arg4[%56, %c0_17] : memref<512x128xf32, #tpu.memory_space<vmem>>, vector<1x128xf32>
      %58 = arith.index_cast %43 : i32 to index
      %c0_18 = arith.constant 0 : index
      %59 = vector.load %arg4[%58, %c0_18] : memref<512x128xf32, #tpu.memory_space<vmem>>, vector<1x128xf32>
      %60 = arith.index_cast %45 : i32 to index
      %c0_19 = arith.constant 0 : index
      %61 = vector.load %arg4[%60, %c0_19] : memref<512x128xf32, #tpu.memory_space<vmem>>, vector<1x128xf32>
      %62 = arith.index_cast %47 : i32 to index
      %c0_20 = arith.constant 0 : index
      %63 = vector.load %arg4[%62, %c0_20] : memref<512x128xf32, #tpu.memory_space<vmem>>, vector<1x128xf32>
      %64 = arith.index_cast %49 : i32 to index
      %c0_21 = arith.constant 0 : index
      %65 = vector.load %arg4[%64, %c0_21] : memref<512x128xf32, #tpu.memory_space<vmem>>, vector<1x128xf32>
      %66 = tpu.concatenate %51, %53, %55, %57, %59, %61, %63, %65 in 0 : vector<1x128xf32>, vector<1x128xf32>, vector<1x128xf32>, vector<1x128xf32>, vector<1x128xf32>, vector<1x128xf32>, vector<1x128xf32>, vector<1x128xf32> -> vector<8x128xf32>
      %67 = arith.index_cast %19 : i32 to index
      %68 = memref.load %arg2[%67] : memref<200xi32, #tpu.memory_space<smem>>
      %69 = arith.index_cast %21 : i32 to index
      %70 = memref.load %arg2[%69] : memref<200xi32, #tpu.memory_space<smem>>
      %71 = arith.index_cast %23 : i32 to index
      %72 = memref.load %arg2[%71] : memref<200xi32, #tpu.memory_space<smem>>
      %73 = arith.index_cast %25 : i32 to index
      %74 = memref.load %arg2[%73] : memref<200xi32, #tpu.memory_space<smem>>
      %75 = arith.index_cast %27 : i32 to index
      %76 = memref.load %arg2[%75] : memref<200xi32, #tpu.memory_space<smem>>
      %77 = arith.index_cast %29 : i32 to index
      %78 = memref.load %arg2[%77] : memref<200xi32, #tpu.memory_space<smem>>
      %79 = arith.index_cast %31 : i32 to index
      %80 = memref.load %arg2[%79] : memref<200xi32, #tpu.memory_space<smem>>
      %81 = arith.index_cast %33 : i32 to index
      %82 = memref.load %arg2[%81] : memref<200xi32, #tpu.memory_space<smem>>
      %83 = arith.index_cast %68 : i32 to index
      %c0_22 = arith.constant 0 : index
      %84 = vector.load %arg5[%83, %c0_22] : memref<512x128xf32, #tpu.memory_space<vmem>>, vector<1x128xf32>
      %85 = arith.index_cast %70 : i32 to index
      %c0_23 = arith.constant 0 : index
      %86 = vector.load %arg5[%85, %c0_23] : memref<512x128xf32, #tpu.memory_space<vmem>>, vector<1x128xf32>
      %87 = arith.index_cast %72 : i32 to index
      %c0_24 = arith.constant 0 : index
      %88 = vector.load %arg5[%87, %c0_24] : memref<512x128xf32, #tpu.memory_space<vmem>>, vector<1x128xf32>
      %89 = arith.index_cast %74 : i32 to index
      %c0_25 = arith.constant 0 : index
      %90 = vector.load %arg5[%89, %c0_25] : memref<512x128xf32, #tpu.memory_space<vmem>>, vector<1x128xf32>
      %91 = arith.index_cast %76 : i32 to index
      %c0_26 = arith.constant 0 : index
      %92 = vector.load %arg5[%91, %c0_26] : memref<512x128xf32, #tpu.memory_space<vmem>>, vector<1x128xf32>
      %93 = arith.index_cast %78 : i32 to index
      %c0_27 = arith.constant 0 : index
      %94 = vector.load %arg5[%93, %c0_27] : memref<512x128xf32, #tpu.memory_space<vmem>>, vector<1x128xf32>
      %95 = arith.index_cast %80 : i32 to index
      %c0_28 = arith.constant 0 : index
      %96 = vector.load %arg5[%95, %c0_28] : memref<512x128xf32, #tpu.memory_space<vmem>>, vector<1x128xf32>
      %97 = arith.index_cast %82 : i32 to index
      %c0_29 = arith.constant 0 : index
      %98 = vector.load %arg5[%97, %c0_29] : memref<512x128xf32, #tpu.memory_space<vmem>>, vector<1x128xf32>
      %99 = tpu.concatenate %84, %86, %88, %90, %92, %94, %96, %98 in 0 : vector<1x128xf32>, vector<1x128xf32>, vector<1x128xf32>, vector<1x128xf32>, vector<1x128xf32>, vector<1x128xf32>, vector<1x128xf32>, vector<1x128xf32> -> vector<8x128xf32>
      %100 = arith.mulf %66, %99 : vector<8x128xf32>
      %cst_30 = arith.constant dense<0.000000e+00> : vector<8xf32>
      %101 = vector.multi_reduction <add>, %100, %cst_30 [1] : vector<8x128xf32> to vector<8xf32>
      %102 = vector.shape_cast %101 : vector<8xf32> to vector<8x1xf32>
      %cst_31 = arith.constant 0.000000e+00 : f32
      %103 = vector.broadcast %cst_31 : f32 to vector<8x1xf32>
      %104 = arith.subf %103, %102 : vector<8x1xf32>
      %cst_32 = arith.constant 0.000000e+00 : f32
      %105 = vector.broadcast %cst_32 : f32 to vector<8x1xf32>
      %106 = arith.maximumf %104, %105 : vector<8x1xf32>
      %107 = math.absf %104 : vector<8x1xf32>
      %cst_33 = arith.constant 0.000000e+00 : f32
      %108 = vector.broadcast %cst_33 : f32 to vector<8x1xf32>
      %109 = arith.subf %108, %107 : vector<8x1xf32>
      %110 = math.exp %109 : vector<8x1xf32>
      %111 = math.log1p %110 : vector<8x1xf32>
      %112 = arith.addf %106, %111 : vector<8x1xf32>
      %c0_34 = arith.constant 0 : index
      %113 = arith.index_cast %19 : i32 to index
      %114 = memref.load %arg3[%c0_34, %113] : memref<8x200xi32, #tpu.memory_space<smem>>
      %c0_35 = arith.constant 0 : index
      %115 = arith.index_cast %21 : i32 to index
      %116 = memref.load %arg3[%c0_35, %115] : memref<8x200xi32, #tpu.memory_space<smem>>
      %c0_36 = arith.constant 0 : index
      %117 = arith.index_cast %23 : i32 to index
      %118 = memref.load %arg3[%c0_36, %117] : memref<8x200xi32, #tpu.memory_space<smem>>
      %c0_37 = arith.constant 0 : index
      %119 = arith.index_cast %25 : i32 to index
      %120 = memref.load %arg3[%c0_37, %119] : memref<8x200xi32, #tpu.memory_space<smem>>
      %c0_38 = arith.constant 0 : index
      %121 = arith.index_cast %27 : i32 to index
      %122 = memref.load %arg3[%c0_38, %121] : memref<8x200xi32, #tpu.memory_space<smem>>
      %c0_39 = arith.constant 0 : index
      %123 = arith.index_cast %29 : i32 to index
      %124 = memref.load %arg3[%c0_39, %123] : memref<8x200xi32, #tpu.memory_space<smem>>
      %c0_40 = arith.constant 0 : index
      %125 = arith.index_cast %31 : i32 to index
      %126 = memref.load %arg3[%c0_40, %125] : memref<8x200xi32, #tpu.memory_space<smem>>
      %c0_41 = arith.constant 0 : index
      %127 = arith.index_cast %33 : i32 to index
      %128 = memref.load %arg3[%c0_41, %127] : memref<8x200xi32, #tpu.memory_space<smem>>
      %129 = arith.index_cast %114 : i32 to index
      %c0_42 = arith.constant 0 : index
      %130 = vector.load %arg5[%129, %c0_42] : memref<512x128xf32, #tpu.memory_space<vmem>>, vector<1x128xf32>
      %131 = arith.index_cast %116 : i32 to index
      %c0_43 = arith.constant 0 : index
      %132 = vector.load %arg5[%131, %c0_43] : memref<512x128xf32, #tpu.memory_space<vmem>>, vector<1x128xf32>
      %133 = arith.index_cast %118 : i32 to index
      %c0_44 = arith.constant 0 : index
      %134 = vector.load %arg5[%133, %c0_44] : memref<512x128xf32, #tpu.memory_space<vmem>>, vector<1x128xf32>
      %135 = arith.index_cast %120 : i32 to index
      %c0_45 = arith.constant 0 : index
      %136 = vector.load %arg5[%135, %c0_45] : memref<512x128xf32, #tpu.memory_space<vmem>>, vector<1x128xf32>
      %137 = arith.index_cast %122 : i32 to index
      %c0_46 = arith.constant 0 : index
      %138 = vector.load %arg5[%137, %c0_46] : memref<512x128xf32, #tpu.memory_space<vmem>>, vector<1x128xf32>
      %139 = arith.index_cast %124 : i32 to index
      %c0_47 = arith.constant 0 : index
      %140 = vector.load %arg5[%139, %c0_47] : memref<512x128xf32, #tpu.memory_space<vmem>>, vector<1x128xf32>
      %141 = arith.index_cast %126 : i32 to index
      %c0_48 = arith.constant 0 : index
      %142 = vector.load %arg5[%141, %c0_48] : memref<512x128xf32, #tpu.memory_space<vmem>>, vector<1x128xf32>
      %143 = arith.index_cast %128 : i32 to index
      %c0_49 = arith.constant 0 : index
      %144 = vector.load %arg5[%143, %c0_49] : memref<512x128xf32, #tpu.memory_space<vmem>>, vector<1x128xf32>
      %145 = tpu.concatenate %130, %132, %134, %136, %138, %140, %142, %144 in 0 : vector<1x128xf32>, vector<1x128xf32>, vector<1x128xf32>, vector<1x128xf32>, vector<1x128xf32>, vector<1x128xf32>, vector<1x128xf32>, vector<1x128xf32> -> vector<8x128xf32>
      %146 = arith.mulf %66, %145 : vector<8x128xf32>
      %cst_50 = arith.constant dense<0.000000e+00> : vector<8xf32>
      %147 = vector.multi_reduction <add>, %146, %cst_50 [1] : vector<8x128xf32> to vector<8xf32>
      %148 = vector.shape_cast %147 : vector<8xf32> to vector<8x1xf32>
      %cst_51 = arith.constant 0.000000e+00 : f32
      %149 = vector.broadcast %cst_51 : f32 to vector<8x1xf32>
      %150 = arith.maximumf %148, %149 : vector<8x1xf32>
      %151 = math.absf %148 : vector<8x1xf32>
      %cst_52 = arith.constant 0.000000e+00 : f32
      %152 = vector.broadcast %cst_52 : f32 to vector<8x1xf32>
      %153 = arith.subf %152, %151 : vector<8x1xf32>
      %154 = math.exp %153 : vector<8x1xf32>
      %155 = math.log1p %154 : vector<8x1xf32>
      %156 = arith.addf %150, %155 : vector<8x1xf32>
      %157 = arith.addf %112, %156 : vector<8x1xf32>
      %c1 = arith.constant 1 : index
      %158 = arith.index_cast %19 : i32 to index
      %159 = memref.load %arg3[%c1, %158] : memref<8x200xi32, #tpu.memory_space<smem>>
      %c1_53 = arith.constant 1 : index
      %160 = arith.index_cast %21 : i32 to index
      %161 = memref.load %arg3[%c1_53, %160] : memref<8x200xi32, #tpu.memory_space<smem>>
      %c1_54 = arith.constant 1 : index
      %162 = arith.index_cast %23 : i32 to index
      %163 = memref.load %arg3[%c1_54, %162] : memref<8x200xi32, #tpu.memory_space<smem>>
      %c1_55 = arith.constant 1 : index
      %164 = arith.index_cast %25 : i32 to index
      %165 = memref.load %arg3[%c1_55, %164] : memref<8x200xi32, #tpu.memory_space<smem>>
      %c1_56 = arith.constant 1 : index
      %166 = arith.index_cast %27 : i32 to index
      %167 = memref.load %arg3[%c1_56, %166] : memref<8x200xi32, #tpu.memory_space<smem>>
      %c1_57 = arith.constant 1 : index
      %168 = arith.index_cast %29 : i32 to index
      %169 = memref.load %arg3[%c1_57, %168] : memref<8x200xi32, #tpu.memory_space<smem>>
      %c1_58 = arith.constant 1 : index
      %170 = arith.index_cast %31 : i32 to index
      %171 = memref.load %arg3[%c1_58, %170] : memref<8x200xi32, #tpu.memory_space<smem>>
      %c1_59 = arith.constant 1 : index
      %172 = arith.index_cast %33 : i32 to index
      %173 = memref.load %arg3[%c1_59, %172] : memref<8x200xi32, #tpu.memory_space<smem>>
      %174 = arith.index_cast %159 : i32 to index
      %c0_60 = arith.constant 0 : index
      %175 = vector.load %arg5[%174, %c0_60] : memref<512x128xf32, #tpu.memory_space<vmem>>, vector<1x128xf32>
      %176 = arith.index_cast %161 : i32 to index
      %c0_61 = arith.constant 0 : index
      %177 = vector.load %arg5[%176, %c0_61] : memref<512x128xf32, #tpu.memory_space<vmem>>, vector<1x128xf32>
      %178 = arith.index_cast %163 : i32 to index
      %c0_62 = arith.constant 0 : index
      %179 = vector.load %arg5[%178, %c0_62] : memref<512x128xf32, #tpu.memory_space<vmem>>, vector<1x128xf32>
      %180 = arith.index_cast %165 : i32 to index
      %c0_63 = arith.constant 0 : index
      %181 = vector.load %arg5[%180, %c0_63] : memref<512x128xf32, #tpu.memory_space<vmem>>, vector<1x128xf32>
      %182 = arith.index_cast %167 : i32 to index
      %c0_64 = arith.constant 0 : index
      %183 = vector.load %arg5[%182, %c0_64] : memref<512x128xf32, #tpu.memory_space<vmem>>, vector<1x128xf32>
      %184 = arith.index_cast %169 : i32 to index
      %c0_65 = arith.constant 0 : index
      %185 = vector.load %arg5[%184, %c0_65] : memref<512x128xf32, #tpu.memory_space<vmem>>, vector<1x128xf32>
      %186 = arith.index_cast %171 : i32 to index
      %c0_66 = arith.constant 0 : index
      %187 = vector.load %arg5[%186, %c0_66] : memref<512x128xf32, #tpu.memory_space<vmem>>, vector<1x128xf32>
      %188 = arith.index_cast %173 : i32 to index
      %c0_67 = arith.constant 0 : index
      %189 = vector.load %arg5[%188, %c0_67] : memref<512x128xf32, #tpu.memory_space<vmem>>, vector<1x128xf32>
      %190 = tpu.concatenate %175, %177, %179, %181, %183, %185, %187, %189 in 0 : vector<1x128xf32>, vector<1x128xf32>, vector<1x128xf32>, vector<1x128xf32>, vector<1x128xf32>, vector<1x128xf32>, vector<1x128xf32>, vector<1x128xf32> -> vector<8x128xf32>
      %191 = arith.mulf %66, %190 : vector<8x128xf32>
      %cst_68 = arith.constant dense<0.000000e+00> : vector<8xf32>
      %192 = vector.multi_reduction <add>, %191, %cst_68 [1] : vector<8x128xf32> to vector<8xf32>
      %193 = vector.shape_cast %192 : vector<8xf32> to vector<8x1xf32>
      %cst_69 = arith.constant 0.000000e+00 : f32
      %194 = vector.broadcast %cst_69 : f32 to vector<8x1xf32>
      %195 = arith.maximumf %193, %194 : vector<8x1xf32>
      %196 = math.absf %193 : vector<8x1xf32>
      %cst_70 = arith.constant 0.000000e+00 : f32
      %197 = vector.broadcast %cst_70 : f32 to vector<8x1xf32>
      %198 = arith.subf %197, %196 : vector<8x1xf32>
      %199 = math.exp %198 : vector<8x1xf32>
      %200 = math.log1p %199 : vector<8x1xf32>
      %201 = arith.addf %195, %200 : vector<8x1xf32>
      %202 = arith.addf %157, %201 : vector<8x1xf32>
      %c2 = arith.constant 2 : index
      %203 = arith.index_cast %19 : i32 to index
      %204 = memref.load %arg3[%c2, %203] : memref<8x200xi32, #tpu.memory_space<smem>>
      %c2_71 = arith.constant 2 : index
      %205 = arith.index_cast %21 : i32 to index
      %206 = memref.load %arg3[%c2_71, %205] : memref<8x200xi32, #tpu.memory_space<smem>>
      %c2_72 = arith.constant 2 : index
      %207 = arith.index_cast %23 : i32 to index
      %208 = memref.load %arg3[%c2_72, %207] : memref<8x200xi32, #tpu.memory_space<smem>>
      %c2_73 = arith.constant 2 : index
      %209 = arith.index_cast %25 : i32 to index
      %210 = memref.load %arg3[%c2_73, %209] : memref<8x200xi32, #tpu.memory_space<smem>>
      %c2_74 = arith.constant 2 : index
      %211 = arith.index_cast %27 : i32 to index
      %212 = memref.load %arg3[%c2_74, %211] : memref<8x200xi32, #tpu.memory_space<smem>>
      %c2_75 = arith.constant 2 : index
      %213 = arith.index_cast %29 : i32 to index
      %214 = memref.load %arg3[%c2_75, %213] : memref<8x200xi32, #tpu.memory_space<smem>>
      %c2_76 = arith.constant 2 : index
      %215 = arith.index_cast %31 : i32 to index
      %216 = memref.load %arg3[%c2_76, %215] : memref<8x200xi32, #tpu.memory_space<smem>>
      %c2_77 = arith.constant 2 : index
      %217 = arith.index_cast %33 : i32 to index
      %218 = memref.load %arg3[%c2_77, %217] : memref<8x200xi32, #tpu.memory_space<smem>>
      %219 = arith.index_cast %204 : i32 to index
      %c0_78 = arith.constant 0 : index
      %220 = vector.load %arg5[%219, %c0_78] : memref<512x128xf32, #tpu.memory_space<vmem>>, vector<1x128xf32>
      %221 = arith.index_cast %206 : i32 to index
      %c0_79 = arith.constant 0 : index
      %222 = vector.load %arg5[%221, %c0_79] : memref<512x128xf32, #tpu.memory_space<vmem>>, vector<1x128xf32>
      %223 = arith.index_cast %208 : i32 to index
      %c0_80 = arith.constant 0 : index
      %224 = vector.load %arg5[%223, %c0_80] : memref<512x128xf32, #tpu.memory_space<vmem>>, vector<1x128xf32>
      %225 = arith.index_cast %210 : i32 to index
      %c0_81 = arith.constant 0 : index
      %226 = vector.load %arg5[%225, %c0_81] : memref<512x128xf32, #tpu.memory_space<vmem>>, vector<1x128xf32>
      %227 = arith.index_cast %212 : i32 to index
      %c0_82 = arith.constant 0 : index
      %228 = vector.load %arg5[%227, %c0_82] : memref<512x128xf32, #tpu.memory_space<vmem>>, vector<1x128xf32>
      %229 = arith.index_cast %214 : i32 to index
      %c0_83 = arith.constant 0 : index
      %230 = vector.load %arg5[%229, %c0_83] : memref<512x128xf32, #tpu.memory_space<vmem>>, vector<1x128xf32>
      %231 = arith.index_cast %216 : i32 to index
      %c0_84 = arith.constant 0 : index
      %232 = vector.load %arg5[%231, %c0_84] : memref<512x128xf32, #tpu.memory_space<vmem>>, vector<1x128xf32>
      %233 = arith.index_cast %218 : i32 to index
      %c0_85 = arith.constant 0 : index
      %234 = vector.load %arg5[%233, %c0_85] : memref<512x128xf32, #tpu.memory_space<vmem>>, vector<1x128xf32>
      %235 = tpu.concatenate %220, %222, %224, %226, %228, %230, %232, %234 in 0 : vector<1x128xf32>, vector<1x128xf32>, vector<1x128xf32>, vector<1x128xf32>, vector<1x128xf32>, vector<1x128xf32>, vector<1x128xf32>, vector<1x128xf32> -> vector<8x128xf32>
      %236 = arith.mulf %66, %235 : vector<8x128xf32>
      %cst_86 = arith.constant dense<0.000000e+00> : vector<8xf32>
      %237 = vector.multi_reduction <add>, %236, %cst_86 [1] : vector<8x128xf32> to vector<8xf32>
      %238 = vector.shape_cast %237 : vector<8xf32> to vector<8x1xf32>
      %cst_87 = arith.constant 0.000000e+00 : f32
      %239 = vector.broadcast %cst_87 : f32 to vector<8x1xf32>
      %240 = arith.maximumf %238, %239 : vector<8x1xf32>
      %241 = math.absf %238 : vector<8x1xf32>
      %cst_88 = arith.constant 0.000000e+00 : f32
      %242 = vector.broadcast %cst_88 : f32 to vector<8x1xf32>
      %243 = arith.subf %242, %241 : vector<8x1xf32>
      %244 = math.exp %243 : vector<8x1xf32>
      %245 = math.log1p %244 : vector<8x1xf32>
      %246 = arith.addf %240, %245 : vector<8x1xf32>
      %247 = arith.addf %202, %246 : vector<8x1xf32>
      %c3 = arith.constant 3 : index
      %248 = arith.index_cast %19 : i32 to index
      %249 = memref.load %arg3[%c3, %248] : memref<8x200xi32, #tpu.memory_space<smem>>
      %c3_89 = arith.constant 3 : index
      %250 = arith.index_cast %21 : i32 to index
      %251 = memref.load %arg3[%c3_89, %250] : memref<8x200xi32, #tpu.memory_space<smem>>
      %c3_90 = arith.constant 3 : index
      %252 = arith.index_cast %23 : i32 to index
      %253 = memref.load %arg3[%c3_90, %252] : memref<8x200xi32, #tpu.memory_space<smem>>
      %c3_91 = arith.constant 3 : index
      %254 = arith.index_cast %25 : i32 to index
      %255 = memref.load %arg3[%c3_91, %254] : memref<8x200xi32, #tpu.memory_space<smem>>
      %c3_92 = arith.constant 3 : index
      %256 = arith.index_cast %27 : i32 to index
      %257 = memref.load %arg3[%c3_92, %256] : memref<8x200xi32, #tpu.memory_space<smem>>
      %c3_93 = arith.constant 3 : index
      %258 = arith.index_cast %29 : i32 to index
      %259 = memref.load %arg3[%c3_93, %258] : memref<8x200xi32, #tpu.memory_space<smem>>
      %c3_94 = arith.constant 3 : index
      %260 = arith.index_cast %31 : i32 to index
      %261 = memref.load %arg3[%c3_94, %260] : memref<8x200xi32, #tpu.memory_space<smem>>
      %c3_95 = arith.constant 3 : index
      %262 = arith.index_cast %33 : i32 to index
      %263 = memref.load %arg3[%c3_95, %262] : memref<8x200xi32, #tpu.memory_space<smem>>
      %264 = arith.index_cast %249 : i32 to index
      %c0_96 = arith.constant 0 : index
      %265 = vector.load %arg5[%264, %c0_96] : memref<512x128xf32, #tpu.memory_space<vmem>>, vector<1x128xf32>
      %266 = arith.index_cast %251 : i32 to index
      %c0_97 = arith.constant 0 : index
      %267 = vector.load %arg5[%266, %c0_97] : memref<512x128xf32, #tpu.memory_space<vmem>>, vector<1x128xf32>
      %268 = arith.index_cast %253 : i32 to index
      %c0_98 = arith.constant 0 : index
      %269 = vector.load %arg5[%268, %c0_98] : memref<512x128xf32, #tpu.memory_space<vmem>>, vector<1x128xf32>
      %270 = arith.index_cast %255 : i32 to index
      %c0_99 = arith.constant 0 : index
      %271 = vector.load %arg5[%270, %c0_99] : memref<512x128xf32, #tpu.memory_space<vmem>>, vector<1x128xf32>
      %272 = arith.index_cast %257 : i32 to index
      %c0_100 = arith.constant 0 : index
      %273 = vector.load %arg5[%272, %c0_100] : memref<512x128xf32, #tpu.memory_space<vmem>>, vector<1x128xf32>
      %274 = arith.index_cast %259 : i32 to index
      %c0_101 = arith.constant 0 : index
      %275 = vector.load %arg5[%274, %c0_101] : memref<512x128xf32, #tpu.memory_space<vmem>>, vector<1x128xf32>
      %276 = arith.index_cast %261 : i32 to index
      %c0_102 = arith.constant 0 : index
      %277 = vector.load %arg5[%276, %c0_102] : memref<512x128xf32, #tpu.memory_space<vmem>>, vector<1x128xf32>
      %278 = arith.index_cast %263 : i32 to index
      %c0_103 = arith.constant 0 : index
      %279 = vector.load %arg5[%278, %c0_103] : memref<512x128xf32, #tpu.memory_space<vmem>>, vector<1x128xf32>
      %280 = tpu.concatenate %265, %267, %269, %271, %273, %275, %277, %279 in 0 : vector<1x128xf32>, vector<1x128xf32>, vector<1x128xf32>, vector<1x128xf32>, vector<1x128xf32>, vector<1x128xf32>, vector<1x128xf32>, vector<1x128xf32> -> vector<8x128xf32>
      %281 = arith.mulf %66, %280 : vector<8x128xf32>
      %cst_104 = arith.constant dense<0.000000e+00> : vector<8xf32>
      %282 = vector.multi_reduction <add>, %281, %cst_104 [1] : vector<8x128xf32> to vector<8xf32>
      %283 = vector.shape_cast %282 : vector<8xf32> to vector<8x1xf32>
      %cst_105 = arith.constant 0.000000e+00 : f32
      %284 = vector.broadcast %cst_105 : f32 to vector<8x1xf32>
      %285 = arith.maximumf %283, %284 : vector<8x1xf32>
      %286 = math.absf %283 : vector<8x1xf32>
      %cst_106 = arith.constant 0.000000e+00 : f32
      %287 = vector.broadcast %cst_106 : f32 to vector<8x1xf32>
      %288 = arith.subf %287, %286 : vector<8x1xf32>
      %289 = math.exp %288 : vector<8x1xf32>
      %290 = math.log1p %289 : vector<8x1xf32>
      %291 = arith.addf %285, %290 : vector<8x1xf32>
      %292 = arith.addf %247, %291 : vector<8x1xf32>
      %c4 = arith.constant 4 : index
      %293 = arith.index_cast %19 : i32 to index
      %294 = memref.load %arg3[%c4, %293] : memref<8x200xi32, #tpu.memory_space<smem>>
      %c4_107 = arith.constant 4 : index
      %295 = arith.index_cast %21 : i32 to index
      %296 = memref.load %arg3[%c4_107, %295] : memref<8x200xi32, #tpu.memory_space<smem>>
      %c4_108 = arith.constant 4 : index
      %297 = arith.index_cast %23 : i32 to index
      %298 = memref.load %arg3[%c4_108, %297] : memref<8x200xi32, #tpu.memory_space<smem>>
      %c4_109 = arith.constant 4 : index
      %299 = arith.index_cast %25 : i32 to index
      %300 = memref.load %arg3[%c4_109, %299] : memref<8x200xi32, #tpu.memory_space<smem>>
      %c4_110 = arith.constant 4 : index
      %301 = arith.index_cast %27 : i32 to index
      %302 = memref.load %arg3[%c4_110, %301] : memref<8x200xi32, #tpu.memory_space<smem>>
      %c4_111 = arith.constant 4 : index
      %303 = arith.index_cast %29 : i32 to index
      %304 = memref.load %arg3[%c4_111, %303] : memref<8x200xi32, #tpu.memory_space<smem>>
      %c4_112 = arith.constant 4 : index
      %305 = arith.index_cast %31 : i32 to index
      %306 = memref.load %arg3[%c4_112, %305] : memref<8x200xi32, #tpu.memory_space<smem>>
      %c4_113 = arith.constant 4 : index
      %307 = arith.index_cast %33 : i32 to index
      %308 = memref.load %arg3[%c4_113, %307] : memref<8x200xi32, #tpu.memory_space<smem>>
      %309 = arith.index_cast %294 : i32 to index
      %c0_114 = arith.constant 0 : index
      %310 = vector.load %arg5[%309, %c0_114] : memref<512x128xf32, #tpu.memory_space<vmem>>, vector<1x128xf32>
      %311 = arith.index_cast %296 : i32 to index
      %c0_115 = arith.constant 0 : index
      %312 = vector.load %arg5[%311, %c0_115] : memref<512x128xf32, #tpu.memory_space<vmem>>, vector<1x128xf32>
      %313 = arith.index_cast %298 : i32 to index
      %c0_116 = arith.constant 0 : index
      %314 = vector.load %arg5[%313, %c0_116] : memref<512x128xf32, #tpu.memory_space<vmem>>, vector<1x128xf32>
      %315 = arith.index_cast %300 : i32 to index
      %c0_117 = arith.constant 0 : index
      %316 = vector.load %arg5[%315, %c0_117] : memref<512x128xf32, #tpu.memory_space<vmem>>, vector<1x128xf32>
      %317 = arith.index_cast %302 : i32 to index
      %c0_118 = arith.constant 0 : index
      %318 = vector.load %arg5[%317, %c0_118] : memref<512x128xf32, #tpu.memory_space<vmem>>, vector<1x128xf32>
      %319 = arith.index_cast %304 : i32 to index
      %c0_119 = arith.constant 0 : index
      %320 = vector.load %arg5[%319, %c0_119] : memref<512x128xf32, #tpu.memory_space<vmem>>, vector<1x128xf32>
      %321 = arith.index_cast %306 : i32 to index
      %c0_120 = arith.constant 0 : index
      %322 = vector.load %arg5[%321, %c0_120] : memref<512x128xf32, #tpu.memory_space<vmem>>, vector<1x128xf32>
      %323 = arith.index_cast %308 : i32 to index
      %c0_121 = arith.constant 0 : index
      %324 = vector.load %arg5[%323, %c0_121] : memref<512x128xf32, #tpu.memory_space<vmem>>, vector<1x128xf32>
      %325 = tpu.concatenate %310, %312, %314, %316, %318, %320, %322, %324 in 0 : vector<1x128xf32>, vector<1x128xf32>, vector<1x128xf32>, vector<1x128xf32>, vector<1x128xf32>, vector<1x128xf32>, vector<1x128xf32>, vector<1x128xf32> -> vector<8x128xf32>
      %326 = arith.mulf %66, %325 : vector<8x128xf32>
      %cst_122 = arith.constant dense<0.000000e+00> : vector<8xf32>
      %327 = vector.multi_reduction <add>, %326, %cst_122 [1] : vector<8x128xf32> to vector<8xf32>
      %328 = vector.shape_cast %327 : vector<8xf32> to vector<8x1xf32>
      %cst_123 = arith.constant 0.000000e+00 : f32
      %329 = vector.broadcast %cst_123 : f32 to vector<8x1xf32>
      %330 = arith.maximumf %328, %329 : vector<8x1xf32>
      %331 = math.absf %328 : vector<8x1xf32>
      %cst_124 = arith.constant 0.000000e+00 : f32
      %332 = vector.broadcast %cst_124 : f32 to vector<8x1xf32>
      %333 = arith.subf %332, %331 : vector<8x1xf32>
      %334 = math.exp %333 : vector<8x1xf32>
      %335 = math.log1p %334 : vector<8x1xf32>
      %336 = arith.addf %330, %335 : vector<8x1xf32>
      %337 = arith.addf %292, %336 : vector<8x1xf32>
      %c5 = arith.constant 5 : index
      %338 = arith.index_cast %19 : i32 to index
      %339 = memref.load %arg3[%c5, %338] : memref<8x200xi32, #tpu.memory_space<smem>>
      %c5_125 = arith.constant 5 : index
      %340 = arith.index_cast %21 : i32 to index
      %341 = memref.load %arg3[%c5_125, %340] : memref<8x200xi32, #tpu.memory_space<smem>>
      %c5_126 = arith.constant 5 : index
      %342 = arith.index_cast %23 : i32 to index
      %343 = memref.load %arg3[%c5_126, %342] : memref<8x200xi32, #tpu.memory_space<smem>>
      %c5_127 = arith.constant 5 : index
      %344 = arith.index_cast %25 : i32 to index
      %345 = memref.load %arg3[%c5_127, %344] : memref<8x200xi32, #tpu.memory_space<smem>>
      %c5_128 = arith.constant 5 : index
      %346 = arith.index_cast %27 : i32 to index
      %347 = memref.load %arg3[%c5_128, %346] : memref<8x200xi32, #tpu.memory_space<smem>>
      %c5_129 = arith.constant 5 : index
      %348 = arith.index_cast %29 : i32 to index
      %349 = memref.load %arg3[%c5_129, %348] : memref<8x200xi32, #tpu.memory_space<smem>>
      %c5_130 = arith.constant 5 : index
      %350 = arith.index_cast %31 : i32 to index
      %351 = memref.load %arg3[%c5_130, %350] : memref<8x200xi32, #tpu.memory_space<smem>>
      %c5_131 = arith.constant 5 : index
      %352 = arith.index_cast %33 : i32 to index
      %353 = memref.load %arg3[%c5_131, %352] : memref<8x200xi32, #tpu.memory_space<smem>>
      %354 = arith.index_cast %339 : i32 to index
      %c0_132 = arith.constant 0 : index
      %355 = vector.load %arg5[%354, %c0_132] : memref<512x128xf32, #tpu.memory_space<vmem>>, vector<1x128xf32>
      %356 = arith.index_cast %341 : i32 to index
      %c0_133 = arith.constant 0 : index
      %357 = vector.load %arg5[%356, %c0_133] : memref<512x128xf32, #tpu.memory_space<vmem>>, vector<1x128xf32>
      %358 = arith.index_cast %343 : i32 to index
      %c0_134 = arith.constant 0 : index
      %359 = vector.load %arg5[%358, %c0_134] : memref<512x128xf32, #tpu.memory_space<vmem>>, vector<1x128xf32>
      %360 = arith.index_cast %345 : i32 to index
      %c0_135 = arith.constant 0 : index
      %361 = vector.load %arg5[%360, %c0_135] : memref<512x128xf32, #tpu.memory_space<vmem>>, vector<1x128xf32>
      %362 = arith.index_cast %347 : i32 to index
      %c0_136 = arith.constant 0 : index
      %363 = vector.load %arg5[%362, %c0_136] : memref<512x128xf32, #tpu.memory_space<vmem>>, vector<1x128xf32>
      %364 = arith.index_cast %349 : i32 to index
      %c0_137 = arith.constant 0 : index
      %365 = vector.load %arg5[%364, %c0_137] : memref<512x128xf32, #tpu.memory_space<vmem>>, vector<1x128xf32>
      %366 = arith.index_cast %351 : i32 to index
      %c0_138 = arith.constant 0 : index
      %367 = vector.load %arg5[%366, %c0_138] : memref<512x128xf32, #tpu.memory_space<vmem>>, vector<1x128xf32>
      %368 = arith.index_cast %353 : i32 to index
      %c0_139 = arith.constant 0 : index
      %369 = vector.load %arg5[%368, %c0_139] : memref<512x128xf32, #tpu.memory_space<vmem>>, vector<1x128xf32>
      %370 = tpu.concatenate %355, %357, %359, %361, %363, %365, %367, %369 in 0 : vector<1x128xf32>, vector<1x128xf32>, vector<1x128xf32>, vector<1x128xf32>, vector<1x128xf32>, vector<1x128xf32>, vector<1x128xf32>, vector<1x128xf32> -> vector<8x128xf32>
      %371 = arith.mulf %66, %370 : vector<8x128xf32>
      %cst_140 = arith.constant dense<0.000000e+00> : vector<8xf32>
      %372 = vector.multi_reduction <add>, %371, %cst_140 [1] : vector<8x128xf32> to vector<8xf32>
      %373 = vector.shape_cast %372 : vector<8xf32> to vector<8x1xf32>
      %cst_141 = arith.constant 0.000000e+00 : f32
      %374 = vector.broadcast %cst_141 : f32 to vector<8x1xf32>
      %375 = arith.maximumf %373, %374 : vector<8x1xf32>
      %376 = math.absf %373 : vector<8x1xf32>
      %cst_142 = arith.constant 0.000000e+00 : f32
      %377 = vector.broadcast %cst_142 : f32 to vector<8x1xf32>
      %378 = arith.subf %377, %376 : vector<8x1xf32>
      %379 = math.exp %378 : vector<8x1xf32>
      %380 = math.log1p %379 : vector<8x1xf32>
      %381 = arith.addf %375, %380 : vector<8x1xf32>
      %382 = arith.addf %337, %381 : vector<8x1xf32>
      %c6 = arith.constant 6 : index
      %383 = arith.index_cast %19 : i32 to index
      %384 = memref.load %arg3[%c6, %383] : memref<8x200xi32, #tpu.memory_space<smem>>
      %c6_143 = arith.constant 6 : index
      %385 = arith.index_cast %21 : i32 to index
      %386 = memref.load %arg3[%c6_143, %385] : memref<8x200xi32, #tpu.memory_space<smem>>
      %c6_144 = arith.constant 6 : index
      %387 = arith.index_cast %23 : i32 to index
      %388 = memref.load %arg3[%c6_144, %387] : memref<8x200xi32, #tpu.memory_space<smem>>
      %c6_145 = arith.constant 6 : index
      %389 = arith.index_cast %25 : i32 to index
      %390 = memref.load %arg3[%c6_145, %389] : memref<8x200xi32, #tpu.memory_space<smem>>
      %c6_146 = arith.constant 6 : index
      %391 = arith.index_cast %27 : i32 to index
      %392 = memref.load %arg3[%c6_146, %391] : memref<8x200xi32, #tpu.memory_space<smem>>
      %c6_147 = arith.constant 6 : index
      %393 = arith.index_cast %29 : i32 to index
      %394 = memref.load %arg3[%c6_147, %393] : memref<8x200xi32, #tpu.memory_space<smem>>
      %c6_148 = arith.constant 6 : index
      %395 = arith.index_cast %31 : i32 to index
      %396 = memref.load %arg3[%c6_148, %395] : memref<8x200xi32, #tpu.memory_space<smem>>
      %c6_149 = arith.constant 6 : index
      %397 = arith.index_cast %33 : i32 to index
      %398 = memref.load %arg3[%c6_149, %397] : memref<8x200xi32, #tpu.memory_space<smem>>
      %399 = arith.index_cast %384 : i32 to index
      %c0_150 = arith.constant 0 : index
      %400 = vector.load %arg5[%399, %c0_150] : memref<512x128xf32, #tpu.memory_space<vmem>>, vector<1x128xf32>
      %401 = arith.index_cast %386 : i32 to index
      %c0_151 = arith.constant 0 : index
      %402 = vector.load %arg5[%401, %c0_151] : memref<512x128xf32, #tpu.memory_space<vmem>>, vector<1x128xf32>
      %403 = arith.index_cast %388 : i32 to index
      %c0_152 = arith.constant 0 : index
      %404 = vector.load %arg5[%403, %c0_152] : memref<512x128xf32, #tpu.memory_space<vmem>>, vector<1x128xf32>
      %405 = arith.index_cast %390 : i32 to index
      %c0_153 = arith.constant 0 : index
      %406 = vector.load %arg5[%405, %c0_153] : memref<512x128xf32, #tpu.memory_space<vmem>>, vector<1x128xf32>
      %407 = arith.index_cast %392 : i32 to index
      %c0_154 = arith.constant 0 : index
      %408 = vector.load %arg5[%407, %c0_154] : memref<512x128xf32, #tpu.memory_space<vmem>>, vector<1x128xf32>
      %409 = arith.index_cast %394 : i32 to index
      %c0_155 = arith.constant 0 : index
      %410 = vector.load %arg5[%409, %c0_155] : memref<512x128xf32, #tpu.memory_space<vmem>>, vector<1x128xf32>
      %411 = arith.index_cast %396 : i32 to index
      %c0_156 = arith.constant 0 : index
      %412 = vector.load %arg5[%411, %c0_156] : memref<512x128xf32, #tpu.memory_space<vmem>>, vector<1x128xf32>
      %413 = arith.index_cast %398 : i32 to index
      %c0_157 = arith.constant 0 : index
      %414 = vector.load %arg5[%413, %c0_157] : memref<512x128xf32, #tpu.memory_space<vmem>>, vector<1x128xf32>
      %415 = tpu.concatenate %400, %402, %404, %406, %408, %410, %412, %414 in 0 : vector<1x128xf32>, vector<1x128xf32>, vector<1x128xf32>, vector<1x128xf32>, vector<1x128xf32>, vector<1x128xf32>, vector<1x128xf32>, vector<1x128xf32> -> vector<8x128xf32>
      %416 = arith.mulf %66, %415 : vector<8x128xf32>
      %cst_158 = arith.constant dense<0.000000e+00> : vector<8xf32>
      %417 = vector.multi_reduction <add>, %416, %cst_158 [1] : vector<8x128xf32> to vector<8xf32>
      %418 = vector.shape_cast %417 : vector<8xf32> to vector<8x1xf32>
      %cst_159 = arith.constant 0.000000e+00 : f32
      %419 = vector.broadcast %cst_159 : f32 to vector<8x1xf32>
      %420 = arith.maximumf %418, %419 : vector<8x1xf32>
      %421 = math.absf %418 : vector<8x1xf32>
      %cst_160 = arith.constant 0.000000e+00 : f32
      %422 = vector.broadcast %cst_160 : f32 to vector<8x1xf32>
      %423 = arith.subf %422, %421 : vector<8x1xf32>
      %424 = math.exp %423 : vector<8x1xf32>
      %425 = math.log1p %424 : vector<8x1xf32>
      %426 = arith.addf %420, %425 : vector<8x1xf32>
      %427 = arith.addf %382, %426 : vector<8x1xf32>
      %c7 = arith.constant 7 : index
      %428 = arith.index_cast %19 : i32 to index
      %429 = memref.load %arg3[%c7, %428] : memref<8x200xi32, #tpu.memory_space<smem>>
      %c7_161 = arith.constant 7 : index
      %430 = arith.index_cast %21 : i32 to index
      %431 = memref.load %arg3[%c7_161, %430] : memref<8x200xi32, #tpu.memory_space<smem>>
      %c7_162 = arith.constant 7 : index
      %432 = arith.index_cast %23 : i32 to index
      %433 = memref.load %arg3[%c7_162, %432] : memref<8x200xi32, #tpu.memory_space<smem>>
      %c7_163 = arith.constant 7 : index
      %434 = arith.index_cast %25 : i32 to index
      %435 = memref.load %arg3[%c7_163, %434] : memref<8x200xi32, #tpu.memory_space<smem>>
      %c7_164 = arith.constant 7 : index
      %436 = arith.index_cast %27 : i32 to index
      %437 = memref.load %arg3[%c7_164, %436] : memref<8x200xi32, #tpu.memory_space<smem>>
      %c7_165 = arith.constant 7 : index
      %438 = arith.index_cast %29 : i32 to index
      %439 = memref.load %arg3[%c7_165, %438] : memref<8x200xi32, #tpu.memory_space<smem>>
      %c7_166 = arith.constant 7 : index
      %440 = arith.index_cast %31 : i32 to index
      %441 = memref.load %arg3[%c7_166, %440] : memref<8x200xi32, #tpu.memory_space<smem>>
      %c7_167 = arith.constant 7 : index
      %442 = arith.index_cast %33 : i32 to index
      %443 = memref.load %arg3[%c7_167, %442] : memref<8x200xi32, #tpu.memory_space<smem>>
      %444 = arith.index_cast %429 : i32 to index
      %c0_168 = arith.constant 0 : index
      %445 = vector.load %arg5[%444, %c0_168] : memref<512x128xf32, #tpu.memory_space<vmem>>, vector<1x128xf32>
      %446 = arith.index_cast %431 : i32 to index
      %c0_169 = arith.constant 0 : index
      %447 = vector.load %arg5[%446, %c0_169] : memref<512x128xf32, #tpu.memory_space<vmem>>, vector<1x128xf32>
      %448 = arith.index_cast %433 : i32 to index
      %c0_170 = arith.constant 0 : index
      %449 = vector.load %arg5[%448, %c0_170] : memref<512x128xf32, #tpu.memory_space<vmem>>, vector<1x128xf32>
      %450 = arith.index_cast %435 : i32 to index
      %c0_171 = arith.constant 0 : index
      %451 = vector.load %arg5[%450, %c0_171] : memref<512x128xf32, #tpu.memory_space<vmem>>, vector<1x128xf32>
      %452 = arith.index_cast %437 : i32 to index
      %c0_172 = arith.constant 0 : index
      %453 = vector.load %arg5[%452, %c0_172] : memref<512x128xf32, #tpu.memory_space<vmem>>, vector<1x128xf32>
      %454 = arith.index_cast %439 : i32 to index
      %c0_173 = arith.constant 0 : index
      %455 = vector.load %arg5[%454, %c0_173] : memref<512x128xf32, #tpu.memory_space<vmem>>, vector<1x128xf32>
      %456 = arith.index_cast %441 : i32 to index
      %c0_174 = arith.constant 0 : index
      %457 = vector.load %arg5[%456, %c0_174] : memref<512x128xf32, #tpu.memory_space<vmem>>, vector<1x128xf32>
      %458 = arith.index_cast %443 : i32 to index
      %c0_175 = arith.constant 0 : index
      %459 = vector.load %arg5[%458, %c0_175] : memref<512x128xf32, #tpu.memory_space<vmem>>, vector<1x128xf32>
      %460 = tpu.concatenate %445, %447, %449, %451, %453, %455, %457, %459 in 0 : vector<1x128xf32>, vector<1x128xf32>, vector<1x128xf32>, vector<1x128xf32>, vector<1x128xf32>, vector<1x128xf32>, vector<1x128xf32>, vector<1x128xf32> -> vector<8x128xf32>
      %461 = arith.mulf %66, %460 : vector<8x128xf32>
      %cst_176 = arith.constant dense<0.000000e+00> : vector<8xf32>
      %462 = vector.multi_reduction <add>, %461, %cst_176 [1] : vector<8x128xf32> to vector<8xf32>
      %463 = vector.shape_cast %462 : vector<8xf32> to vector<8x1xf32>
      %cst_177 = arith.constant 0.000000e+00 : f32
      %464 = vector.broadcast %cst_177 : f32 to vector<8x1xf32>
      %465 = arith.maximumf %463, %464 : vector<8x1xf32>
      %466 = math.absf %463 : vector<8x1xf32>
      %cst_178 = arith.constant 0.000000e+00 : f32
      %467 = vector.broadcast %cst_178 : f32 to vector<8x1xf32>
      %468 = arith.subf %467, %466 : vector<8x1xf32>
      %469 = math.exp %468 : vector<8x1xf32>
      %470 = math.log1p %469 : vector<8x1xf32>
      %471 = arith.addf %465, %470 : vector<8x1xf32>
      %472 = arith.addf %427, %471 : vector<8x1xf32>
      %473 = tpu.iota {dimensions = array<i32: 0>} : vector<8x1xi32>
      %474 = vector.broadcast %17 : i32 to vector<8x1xi32>
      %475 = arith.addi %474, %473 : vector<8x1xi32>
      %c200_i32 = arith.constant 200 : i32
      %476 = vector.broadcast %c200_i32 : i32 to vector<8x1xi32>
      %477 = arith.cmpi slt, %475, %476 : vector<8x1xi32>
      %cst_179 = arith.constant 0.000000e+00 : f32
      %478 = vector.broadcast %cst_179 : f32 to vector<8x1xf32>
      %479 = arith.select %477, %472, %478 : vector<8x1xi1>, vector<8x1xf32>
      %cst_180 = arith.constant dense<0.000000e+00> : vector<1xf32>
      %480 = vector.multi_reduction <add>, %479, %cst_180 [0] : vector<8x1xf32> to vector<1xf32>
      %481 = vector.shape_cast %480 : vector<1xf32> to vector<1x1xf32>
      %482 = arith.addf %arg8, %481 : vector<1x1xf32>
      scf.yield %482 : vector<1x1xf32>
    }
    %c13_i32_0 = arith.constant 13 : i32
    %4 = tpu.iota {dimensions = array<i32: 0>} : vector<8x128xi32>
    %5 = tpu.iota {dimensions = array<i32: 1>} : vector<8x128xi32>
    %c0_i32_1 = arith.constant 0 : i32
    %6 = vector.broadcast %c0_i32_1 : i32 to vector<8x128xi32>
    %7 = arith.cmpi eq, %4, %6 : vector<8x128xi32>
    %c0_i32_2 = arith.constant 0 : i32
    %8 = vector.broadcast %c0_i32_2 : i32 to vector<8x128xi32>
    %9 = arith.cmpi eq, %5, %8 : vector<8x128xi32>
    %10 = arith.andi %7, %9 : vector<8x128xi1>
    %cst_3 = arith.constant 0.000000e+00 : f32
    %11 = vector.shape_cast %3 : vector<1x1xf32> to vector<1x1xf32>
    %12 = vector.broadcast %11 : vector<1x1xf32> to vector<8x128xf32>
    %13 = vector.broadcast %cst_3 : f32 to vector<8x128xf32>
    %14 = arith.select %10, %12, %13 : vector<8x128xi1>, vector<8x128xf32>
    %c0 = arith.constant 0 : index
    %c0_4 = arith.constant 0 : index
    %15 = vector.load %arg6[%c0, %c0_4] : memref<8x128xf32, #tpu.memory_space<vmem>>, vector<8x128xf32>
    tpu.vector_store %arg6[%c0, %c0_4], %14 {strides = array<i32>} : memref<8x128xf32, #tpu.memory_space<vmem>>, vector<8x128xf32>,
    return
  }
  func.func @transform_0(%arg0: i32, %arg1: memref<200xi32, #tpu.memory_space<smem>>, %arg2: memref<200xi32, #tpu.memory_space<smem>>, %arg3: memref<8x200xi32, #tpu.memory_space<smem>>) -> (i32, i32) {
    %c0_i32 = arith.constant 0 : i32
    %c0_i32_0 = arith.constant 0 : i32
    %c0_i32_1 = arith.constant 0 : i32
    return %c0_i32, %c0_i32_0 : i32, i32
  }
  func.func @transform_1(%arg0: i32, %arg1: memref<200xi32, #tpu.memory_space<smem>>, %arg2: memref<200xi32, #tpu.memory_space<smem>>, %arg3: memref<8x200xi32, #tpu.memory_space<smem>>) -> (i32, i32) {
    %c0_i32 = arith.constant 0 : i32
    %c0_i32_0 = arith.constant 0 : i32
    %c0_i32_1 = arith.constant 0 : i32
    return %c0_i32, %c0_i32_0 : i32, i32
  }
  func.func @transform_2(%arg0: i32, %arg1: memref<200xi32, #tpu.memory_space<smem>>, %arg2: memref<200xi32, #tpu.memory_space<smem>>, %arg3: memref<8x200xi32, #tpu.memory_space<smem>>) -> (i32, i32) {
    %c0_i32 = arith.constant 0 : i32
    %c0_i32_0 = arith.constant 0 : i32
    return %arg0, %c0_i32 : i32, i32
  }
}

</mosaic_0001>

<bundles_post_ra>
// kernel: tpu_custom_call.1
= control target key start
LH: loop header
LB: loop body
LE: loop exit
PB: predicated region body
PF: predicated region fallthrough
CT: control target
= control target key end

     0   :  { %s1587_s24 = smov [#allocation3]   ;;  %s1588_s25 = smov [#allocation4]   ;;  %s2224_s0 = inlined_call_operand.hbm [shape: s32[200], index: 0, kind: input, shape index: {}]   ;;  %s2225_s3 = inlined_call_operand.hbm [shape: f32[512,128], index: 3, kind: input, shape index: {}]   ;;  %s2226_s4 = inlined_call_operand.hbm [shape: f32[512,128], index: 4, kind: input, shape index: {}]   ;;  %s2227_s5 = inlined_call_operand.hbm [shape: f32[16,128], index: 5, kind: output, shape index: {}]   ;;  %s2228_s1 = inlined_call_operand.hbm [shape: s32[200], index: 1, kind: input, shape index: {}]   ;;  %s2229_s2 = inlined_call_operand.hbm [shape: s32[8,200], index: 2, kind: input, shape index: {}]  }
   0x1   :  { %2276 = sst [smem:[#allocation40_spill]] %s2225_s3  ;;  %s11_s20 = sshll.u32 %s2224_s0, 4  ;;  %s12_s20 = int_to_ptr.hbm [resolvable:$true] %s11_s20 }
   0x2   :  { %2277 = sst [smem:[#allocation41_spill]] %s2226_s4  ;;  %s16_s23 = sshll.u32 %s2228_s1, 4  ;;  %s17_s23 = int_to_ptr.hbm [resolvable:$true] %s16_s23 }
   0x3   :  { %2278 = sst [smem:[#allocation42_spill]] %s2227_s5  ;;  %s21_s28 = sshll.u32 %s2229_s2, 4  ;;  %s22_s28 = int_to_ptr.hbm [resolvable:$true] %s21_s28 }
   0x4   :  { %14 = dma.hbm_to_smem %s12_s20, 32, %s1587_s24, [#allocation2] }
   0x5   :  { %19 = dma.hbm_to_smem %s17_s23, 32, %s1588_s25, [#allocation2] }
   0x6   :  { %s1589_s29 = smov [#allocation5]  }
   0x7   :  { %24 = dma.hbm_to_smem %s22_s28, 256, %s1589_s29, [#allocation2] }
   0x8   :  { %1549 = dma.done.wait [#allocation2], 320 }
   0x9   :  { %1550 = vsyncadd [#allocation2], 4294966976 }
   0xa   :  { %27 = sfence }
   0xb   :  { %28 = vsyncpa [#allocation7], 0 }
   0xc   :  { %29 = vsyncpa [#allocation10], 0 }
   0xd   :  { %30 = vsyncpa [#allocation8], 0 }
   0xe   :  { %32 = vsyncpa [#allocation8 + $0x1], 0  ;;  %s1633_s0 = smov 0   ;;  %s1635_s1 = smov 0  }
   0xf   :  { %s1637_s30 = smov 0   ;;  %s1639_s6 = smov 0  }
  0x10 LB: > { %2279 = sst [smem:[#allocation16_spill]] %s1565_s0  ;;  %s1654_s2 = sadd.s32 4294967295, %s1577_s6   ;;  %s1577_s6 = sphi %s1639_s6, %s2363_s6   ;;  %s1573_s30 = sphi %s1637_s30, %s2366_s30   ;;  %s1569_s1 = sphi %s1635_s1, %s2365_s1   ;;  %s1565_s0 = sphi %s1633_s0, %s2364_s0  }
  0x11   : > { %2280 = sst [smem:[#allocation17_spill]] %s1569_s1  ;;  %s1263_s7 = sadd.s32 4294967294, %s1577_s6  }
  0x12   : > { %2281 = sst [smem:[#allocation18_spill]] %s1573_s30  ;;  %s1658_s8 = sadd.s32 1, %s1577_s6  }
  0x13   : > { %2282 = sst [smem:[#allocation19_spill]] %s1577_s6  ;;  %s87_s9 = sadd.s32 1, %s1573_s30 }
  0x14   : > { %2283 = sst [smem:[#allocation20_spill]] %s1654_s2  ;;  %s84_s10 = ssub.s32 %s1577_s6, %s1658_s8 }
  0x15   : > { %2284 = sst [smem:[#allocation21_spill]] %s1658_s8  ;;  %p97_p0 = scmp.ne.s32.totalorder %s1573_s30, %s1569_s1 }
  0x16   : > { %p85_p1 = scmp.eq.s32.totalorder %s84_s10, 0  ;;  %p98_p2 = scmp.eq.s32.totalorder %s1654_s2, 1 }
  0x17   : > { %p103_p3 = scmp.ne.s32.totalorder %s1569_s1, %s1565_s0  ;;  %p104_p4 = scmp.eq.s32.totalorder %s1263_s7, 1 }
  0x18   : > { %s1669_s11 = scalar_select %p85_p1, %s1573_s30, %s87_s9  }
  0x19   : > { %p1671_p5 = por %p98_p2, %p97_p0  ;;  %p1675_p6 = por %p104_p4, %p103_p3 }
  0x1a   : > { %2285 = sst [smem:[#allocation22_spill]] %s1669_s11  ;;  %p1264_p7 = scmp.ge.s32.totalorder %s1577_s6, 1 }
  0x1b   : > { %s2286_s12 = scalar_select %p1671_p5, 1, 0 }
  0x1c   : > { %s2288_s13 = scalar_select %p1675_p6, 1, 0 }
  0x1d   : > { %2287 = sst [smem:[#allocation23_spill]] %s2286_s12  ;;  %p111_p8 = scmp.lt.s32.totalorder %s1577_s6, 3 }
  0x1e   : > { %2289 = sst [smem:[#allocation24_spill]] %s2288_s13  ;;  %p1305_p9 = scmp.eq.s32.totalorder %s1654_s2, 0 }
  0x1f   : > { %p1682_p10 = pnand %p1264_p7, %p111_p8  ;;  %s2291_s3 = sld [smem:[#allocation40_spill]] }
  0x20   : > { %s1590_s18 = smov [#allocation6]   ;;  %s2292_s4 = sld [smem:[#allocation41_spill]] }
  0x21   : > { %p1294_p11 = pneg %p1682_p10  ;;  %s124_s19 = sshll.u32 %s1590_s18, 4  ;;  %s125_s19 = int_to_ptr.vmem [resolvable:$true] %s124_s19 }
  0x22   : > { %s1591_s23 = smov 128   ;;  %s1592_s24 = smov 8  }
  0x23   : > { %p1295_p12 = pnand %p1305_p9, %p1294_p11  ;;  %s1593_s25 = smov [#allocation9]  }
  0x24   : > { %s138_s26 = sshll.u32 %s1593_s25, 4  ;;  %154 = sbr.rel (%p1682_p10) target bundleno = 418 (0x1a2), region = 28  ;;  %s139_s26 = int_to_ptr.vmem [resolvable:$true] %s138_s26 }
  0x25   : > { %s122_s17 = sshll.u32 %s2291_s3, 4  ;;  %s123_s17 = int_to_ptr.hbm [resolvable:$true] %s122_s17 }
  0x26   : > { %s136_s22 = sshll.u32 %s2292_s4, 4  ;;  %s137_s22 = int_to_ptr.hbm [resolvable:$true] %s136_s22 }
  0x27   : > { %1297 = dma.hbm_to_vmem [thread:$0]  (!%p1295_p12), %s123_s17, 8192, %s125_s19, [#allocation7], %s1591_s23, %s1591_s23, %s1592_s24  }
  0x28   : > { %1300 = dma.hbm_to_vmem [thread:$0]  (!%p1295_p12), %s137_s22, 8192, %s139_s26, [#allocation10], %s1591_s23, %s1591_s23, %s1592_s24  }
  0x29   : > { %1552 = dma.done.wait (%p1305_p9), [#allocation7], 8192  }
  0x2a   : > { %1554 = vsyncadd (%p1305_p9), [#allocation7], 4294959104 }
  0x2b   : > { %1556 = dma.done.wait (%p1305_p9), [#allocation10], 8192  }
  0x2c   : > { %1558 = vsyncadd (%p1305_p9), [#allocation10], 4294959104  ;;  %s2230_s27 = sand.u32 1, %s1569_s1   ;;  %v1713_v0 = vmov 0.0   ;;  %s1715_s9 = smov 0  }
  0x2d   : > { %s1710_s29 = sshll.u32 %s2230_s27, 3 }
  0x2e   : > { %2293 = sst [smem:[#allocation25_spill]] %s1710_s29 }
  0x2f LB: >> { %s2294_s2 = sld [smem:[#allocation20_spill]]  ;;  %s1271_s10 = sshll.u32 %s1585_s9, 3  ;;  %vm255_vm0 = vcmask 1040384   ;;  %vm257_vm1 = vcmask 1041408   ;;  %vm259_vm2 = vcmask 1042432   ;;  %vm261_vm3 = vcmask 1043456   ;;  %s1585_s9 = sphi %s1715_s9, %s183_s9   ;;  %v1581_v0 = vphi %v1713_v0, %v2351_v0  }
  0x30   : >> { %2295 = sst [smem:[#allocation26_spill]] %s1585_s9  ;;  %vm263_vm4 = vcmask 1044480   ;;  %vm265_vm5 = vcmask 1045504   ;;  %vm267_vm6 = vcmask 1046528  }
  0x35   : >> { %s2296_s28 = smul.u32 104, %s2294_s2 }
  0x37   : >> { %s1726_s14 = sadd.s32 %s1271_s10, %s2296_s28 }
  0x38   : >> { %2297 = sst [smem:[#allocation27_spill]] %s1726_s14  ;;  %p187_p13 = scmp.lt.s32.totalorder %s1726_s14, 199 }
  0x39   : >> { %s189_s15 = sadd.s32 1, %s1726_s14  ;;  %s192_s16 = sadd.s32 2, %s1726_s14 }
  0x3a   : >> { %p190_p0 = scmp.lt.s32.totalorder %s189_s15, 199  ;;  %p193_p1 = scmp.lt.s32.totalorder %s192_s16, 199 }
  0x3b   : >> { %s1732_s17 = scalar_select %p187_p13, %s1726_s14, 199 }
  0x3c   : >> { %s2368_s15 = smov (!%p190_p0, %s189_s15), 199  ;;  %s195_s18 = sadd.s32 3, %s1726_s14 }
  0x3d   : >> { %p196_p2 = scmp.lt.s32.totalorder %s195_s18, 199  ;;  %s198_s19 = sadd.s32 4, %s1726_s14 }
  0x3e   : >> { %s2370_s16 = smov (!%p193_p1, %s192_s16), 199  ;;  %p199_p3 = scmp.lt.s32.totalorder %s198_s19, 199 }
  0x3f   : >> { %s2372_s18 = smov (!%p196_p2, %s195_s18), 199  ;;  %s201_s20 = sadd.s32 5, %s1726_s14 }
  0x40   : >> { %p202_p4 = scmp.lt.s32.totalorder %s201_s20, 199  ;;  %s204_s21 = sadd.s32 6, %s1726_s14 }
  0x41   : >> { %s2374_s19 = smov (!%p199_p3, %s198_s19), 199  ;;  %p205_p7 = scmp.lt.s32.totalorder %s204_s21, 199 }
  0x42   : >> { %s2376_s20 = smov (!%p202_p4, %s201_s20), 199  ;;  %s207_s22 = sadd.s32 7, %s1726_s14 }
  0x43   : >> { %p208_p8 = scmp.lt.s32.totalorder %s207_s22, 199  ;;  %s210_s23 = sld [smem:[#allocation3 + %s1732_s17]] }
  0x44   : >> { %s2378_s21 = smov (!%p205_p7, %s204_s21), 199  ;;  %s211_s24 = sld [smem:[#allocation3 + %s2368_s15]] }
  0x45   : >> { %s2380_s22 = smov (!%p208_p8, %s207_s22), 199  ;;  %s212_s26 = sld [smem:[#allocation3 + %s2370_s16]] }
  0x46   : >> { %s1758_s10 = sand.u32 127, %s1732_s17  ;;  %s213_s28 = sld [smem:[#allocation3 + %s2372_s18]] }
  0x47   : >> { %2298 = sst [smem:[#allocation28_spill]] %s1758_s10  ;;  %s1765_s4 = sand.u32 127, %s2368_s15 }
  0x48   : >> { %s214_s7 = sld [smem:[#allocation3 + %s2374_s19]] }
  0x49   : >> { %s215_s3 = sld [smem:[#allocation3 + %s2376_s20]]  ;;  %s218_s13 = scalar_lea.vmem [#allocation6], %s210_s23 }
  0x4a   : >> { %2299 = sst [smem:[#allocation29_spill]] %s1765_s4  ;;  %v219_v1 = vld [vmem:[%s218_s13] sm:$0x1]  ;;  %s220_s25 = scalar_lea.vmem [#allocation6], %s211_s24 }
  0x4b   : >> { %s1768_s11 = sld [smem:[#allocation3 + %s2378_s21]]  ;;  %v221_v2 = vld [vmem:[%s220_s25] sm:$0x1]  ;;  %s222_s27 = scalar_lea.vmem [#allocation6], %s212_s26 }
  0x4c   : >> { %s1772_s8 = sld [smem:[#allocation3 + %s2380_s22]]  ;;  %v223_v3 = vld [vmem:[%s222_s27] sm:$0x1]  ;;  %v235_v4 = vrot.slane %v221_v2, 7  ;;  %s224_s5 = scalar_lea.vmem [#allocation6], %s213_s28 }
  0x4d   : >> { %s1775_s0 = sld [smem:[#allocation4 + %s1732_s17]]  ;;  %v225_v5 = vld [vmem:[%s224_s5] sm:$0x1]  ;;  %v238_v6 = vrot.slane %v223_v3, 6 }
  0x4e   : >> { %s1778_s6 = sld [smem:[#allocation4 + %s2368_s15]]  ;;  %s226_s13 = scalar_lea.vmem [#allocation6], %s214_s7  ;;  %v241_v8 = vrot.slane %v225_v5, 5  ;;  %v256_v9 = vsel %vm255_vm0, %v219_v1, %v235_v4 }
  0x4f   : >> { %s1781_s30 = sld [smem:[#allocation4 + %s2370_s16]]  ;;  %v227_v7 = vld [vmem:[%s226_s13] sm:$0x1]  ;;  %s228_s23 = scalar_lea.vmem [#allocation6], %s215_s3  ;;  %v258_v12 = vsel %vm257_vm1, %v256_v9, %v238_v6 }
  0x50   : >> { %s1785_s27 = sld [smem:[#allocation4 + %s2372_s18]]  ;;  %v229_v10 = vld [vmem:[%s228_s23] sm:$0x1]  ;;  %v244_v11 = vrot.slane %v227_v7, 4  ;;  %v260_v15 = vsel %vm259_vm2, %v258_v12, %v241_v8  ;;  %s1807_s13 = sand.u32 127, %s2370_s16 }
  0x51   : >> { %s1789_s5 = sld [smem:[#allocation4 + %s2374_s19]]  ;;  %s230_s28 = scalar_lea.vmem [#allocation6], %s1768_s11  ;;  %v247_v14 = vrot.slane %v229_v10, 3 }
  0x52   : >> { %v231_v13 = vld [vmem:[%s230_s28] sm:$0x1]  ;;  %s1794_s7 = sld [smem:[#allocation4 + %s2376_s20]]  ;;  %v262_v16 = vsel %vm261_vm3, %v260_v15, %v244_v11  ;;  %s232_s24 = scalar_lea.vmem [#allocation6], %s1772_s8 }
  0x53   : >> { %s1798_s3 = sld [smem:[#allocation4 + %s2378_s21]]  ;;  %v233_v17 = vld [vmem:[%s232_s24] sm:$0x1]  ;;  %v250_v18 = vrot.slane %v231_v13, 2  ;;  %s277_s25 = scalar_lea.vmem [#allocation9], %s1775_s0  ;;  %v264_v21 = vsel %vm263_vm4, %v262_v16, %v247_v14 }
  0x54   : >> { %s1802_s11 = sld [smem:[#allocation4 + %s2380_s22]]  ;;  %v278_v19 = vld [vmem:[%s277_s25] sm:$0x1]  ;;  %s279_s26 = scalar_lea.vmem [#allocation9], %s1778_s6  ;;  %v253_v26 = vrot.slane %v233_v17, 1 }
  0x55   : >> { %v280_v20 = vld [vmem:[%s279_s26] sm:$0x1]  ;;  %2300 = sst [smem:[#allocation30_spill]] %s1807_s13  ;;  %s281_s23 = scalar_lea.vmem [#allocation9], %s1781_s30  ;;  %v266_v30 = vsel %vm265_vm5, %v264_v21, %v250_v18 }
  0x56   : >> { %v282_v22 = vld [vmem:[%s281_s23] sm:$0x1]  ;;  %v294_v23 = vrot.slane %v280_v20, 7  ;;  %s361_s8 = sshra.s32 %s2372_s18, 7  ;;  %s283_s28 = scalar_lea.vmem [#allocation9], %s1785_s27  ;;  %v1835_v40 = vsel %vm267_vm6, %v266_v30, %v253_v26 }
  0x57   : >> { %v284_v24 = vld [vmem:[%s283_s28] sm:$0x1]  ;;  %v297_v25 = vrot.slane %v282_v22, 6  ;;  %s1814_s0 = sand.u32 127, %s2372_s18  ;;  %s285_s6 = scalar_lea.vmem [#allocation9], %s1789_s5 }
  0x58   : >> { %2301 = sst [smem:[#allocation31_spill]] %s1814_s0  ;;  %v286_v27 = vld [vmem:[%s285_s6] sm:$0x1]  ;;  %v300_v28 = vrot.slane %v284_v24, 5  ;;  %v314_v29 = vsel %vm255_vm0, %v278_v19, %v294_v23  ;;  %s368_s30 = sshra.s32 %s2374_s19, 7 }
  0x59   : >> { %s287_s27 = scalar_lea.vmem [#allocation9], %s1794_s7  ;;  %v303_v32 = vrot.slane %v286_v27, 4  ;;  %v315_v33 = vsel %vm257_vm1, %v314_v29, %v297_v25  ;;  %s1823_s24 = sand.u32 127, %s2374_s19 }
  0x5a   : >> { %v288_v31 = vld [vmem:[%s287_s27] sm:$0x1]  ;;  %2302 = sst [smem:[#allocation32_spill]] %s1823_s24  ;;  %s289_s5 = scalar_lea.vmem [#allocation9], %s1798_s3  ;;  %v316_v36 = vsel %vm259_vm2, %v315_v33, %v300_v28 }
  0x5b   : >> { %v290_v34 = vld [vmem:[%s289_s5] sm:$0x1]  ;;  %v306_v35 = vrot.slane %v288_v31, 3  ;;  %s375_s25 = sshra.s32 %s2376_s20, 7  ;;  %s291_s26 = scalar_lea.vmem [#allocation9], %s1802_s11  ;;  %v317_v39 = vsel %vm261_vm3, %v316_v36, %v303_v32 }
  0x5c   : >> { %v292_v37 = vld [vmem:[%s291_s26] sm:$0x1]  ;;  %v309_v38 = vrot.slane %v290_v34, 2  ;;  %s1831_s7 = sand.u32 127, %s2376_s20  ;;  %s382_s23 = sshra.s32 %s2378_s21, 7 }
  0x5d   : >> { %2303 = sst [smem:[#allocation33_spill]] %s1831_s7  ;;  %v312_v41 = vrot.slane %v292_v37, 1  ;;  %v318_v42 = vsel %vm263_vm4, %v317_v39, %v306_v35  ;;  %s1839_s3 = sand.u32 127, %s2378_s21 }
  0x5e   : >> { %2304 = sst [smem:[#allocation34_spill]] %s1839_s3  ;;  %s389_s11 = sshra.s32 %s2380_s22, 7  ;;  %v319_v43 = vsel %vm265_vm5, %v318_v42, %v309_v38 }
  0x5f   : >> { %s1844_s28 = sand.u32 127, %s2380_s22  ;;  %s2305_s6 = sshra.s32 %s1732_s17, 7  ;;  %v320_v44 = vsel %vm267_vm6, %v319_v43, %v312_v41 }
  0x60   : >> { %s1848_s27 = sshll.u32 %s2305_s6, 10  ;;  %s2307_s20 = sshra.s32 %s2368_s15, 7  ;;  %v321_v45 = vmul.f32 %v320_v44, %v1835_v40 }
  0x61   : >> { %2306 = sst [smem:[#allocation35_spill]] %s1848_s27  ;;  %s1853_s5 = sshll.u32 %s2307_s20, 10 }
  0x62   : >> { %2308 = sst [smem:[#allocation36_spill]] %s1853_s5  ;;  %s2309_s26 = sshra.s32 %s2370_s16, 7  ;;  %322 = vadd.xlane.f32.xlu0 %v321_v45 }
  0x63   : >> { %s1857_s21 = sshll.u32 %s2309_s26, 10  ;;  %s1862_s22 = sshll.u32 %s361_s8, 10 }
  0x64   : >> { %2310 = sst [smem:[#allocation37_spill]] %s1857_s21  ;;  %s1866_s17 = sshll.u32 %s368_s30, 10 }
  0x65   : >> { %2311 = sst [smem:[#allocation38_spill]] %s1862_s22  ;;  %s1868_s6 = sshll.u32 %s375_s25, 10 }
  0x66   : >> { %s1870_s15 = sshll.u32 %s382_s23, 10  ;;  %s1872_s16 = sshll.u32 %s389_s11, 10 }
  0x67   : >> { %2312 = sst [smem:[#allocation39_spill]] %s1872_s16  ;;  %s633_s20 = sadd.s32 384, %s1758_s10 }
  0x68   : >> { %s634_s26 = sadd.s32 %s1848_s27, %s633_s20  ;;  %s636_s18 = sadd.s32 384, %s1765_s4 }
  0x69   : >> { %s635_s8 = sld [smem:[#allocation5 + %s634_s26]]  ;;  %s637_s19 = sadd.s32 %s1853_s5, %s636_s18 }
  0x6a   : >> { %s638_s30 = sld [smem:[#allocation5 + %s637_s19]]  ;;  %s639_s25 = sadd.s32 384, %s1807_s13 }
  0x6b   : >> { %s640_s12 = sadd.s32 %s1857_s21, %s639_s25  ;;  %s642_s23 = sadd.s32 384, %s1814_s0 }
  0x6c   : >> { %s641_s1 = sld [smem:[#allocation5 + %s640_s12]]  ;;  %s643_s29 = sadd.s32 %s1862_s22, %s642_s23 }
  0x6d   : >> { %s644_s2 = sld [smem:[#allocation5 + %s643_s29]]  ;;  %s645_s9 = sadd.s32 384, %s1823_s24 }
  0x6e   : >> { %s646_s11 = sadd.s32 %s1866_s17, %s645_s9  ;;  %s648_s14 = sadd.s32 384, %s1831_s7 }
  0x6f   : >> { %s647_s10 = sld [smem:[#allocation5 + %s646_s11]]  ;;  %s649_s20 = sadd.s32 %s1868_s6, %s648_s14 }
  0x70   : >> { %s650_s27 = sld [smem:[#allocation5 + %s649_s20]]  ;;  %s651_s4 = sadd.s32 384, %s1839_s3 }
  0x71   : >> { %s652_s26 = sadd.s32 %s1870_s15, %s651_s4  ;;  %s2313_s5 = sld [smem:[#allocation28_spill]] }
  0x72   : >> { %s2314_s18 = sld [smem:[#allocation35_spill]]  ;;  %s654_s19 = sadd.s32 384, %s1844_s28 }
  0x73   : >> { %s653_s13 = sld [smem:[#allocation5 + %s652_s26]]  ;;  %s655_s21 = sadd.s32 %s1872_s16, %s654_s19 }
  0x74   : >> { %s656_s25 = sld [smem:[#allocation5 + %s655_s21]]  ;;  %s657_s0 = scalar_lea.vmem [#allocation9], %s635_s8 }
  0x75   : >> { %v658_v46 = vld [vmem:[%s657_s0] sm:$0x1]  ;;  %s659_s12 = scalar_lea.vmem [#allocation9], %s638_s30  ;;  %s2315_s23 = sld [smem:[#allocation29_spill]] }
  0x76   : >> { %s2316_s29 = sld [smem:[#allocation36_spill]]  ;;  %v660_v47 = vld [vmem:[%s659_s12] sm:$0x1]  ;;  %s661_s9 = scalar_lea.vmem [#allocation9], %s641_s1 }
  0x77   : >> { %v662_v48 = vld [vmem:[%s661_s9] sm:$0x1]  ;;  %s663_s14 = scalar_lea.vmem [#allocation9], %s644_s2  ;;  %s665_s11 = scalar_lea.vmem [#allocation9], %s647_s10  ;;  %v674_v51 = vrot.slane %v660_v47, 7 }
  0x78   : >> { %v664_v49 = vld [vmem:[%s663_s14] sm:$0x1]  ;;  %s667_s20 = scalar_lea.vmem [#allocation9], %s650_s27  ;;  %v677_v53 = vrot.slane %v662_v48, 6  ;;  %s2317_s0 = sld [smem:[#allocation30_spill]] }
  0x79   : >> { %v666_v50 = vld [vmem:[%s665_s11] sm:$0x1]  ;;  %v680_v54 = vrot.slane %v664_v49, 5  ;;  %s459_s21 = sadd.s32 128, %s2313_s5  ;;  %s2318_s1 = sld [smem:[#allocation37_spill]]  ;;  %v694_v57 = vsel %vm255_vm0, %v658_v46, %v674_v51 }
  0x7a   : >> { %v668_v52 = vld [vmem:[%s667_s20] sm:$0x1]  ;;  %v683_v55 = vrot.slane %v666_v50, 4  ;;  %s460_s2 = sadd.s32 %s2314_s18, %s459_s21  ;;  %s669_s30 = scalar_lea.vmem [#allocation9], %s653_s13  ;;  %v695_v59 = vsel %vm257_vm1, %v694_v57, %v677_v53 }
  0x7b   : >> { %v686_v56 = vrot.slane %v668_v52, 3  ;;  %s2319_s10 = sld [smem:[#allocation31_spill]]  ;;  %v670_v58 = vld [vmem:[%s669_s30] sm:$0x1]  ;;  %s671_s26 = scalar_lea.vmem [#allocation9], %s656_s25  ;;  %v696_v62 = vsel %vm259_vm2, %v695_v59, %v680_v54 }
  0x7c   : >> { %s1898_s27 = sld [smem:[#allocation5 + %s460_s2]]  ;;  %v672_v60 = vld [vmem:[%s671_s26] sm:$0x1]  ;;  %v689_v61 = vrot.slane %v670_v58, 2  ;;  %s462_s19 = sadd.s32 128, %s2315_s23  ;;  %v697_v1 = vsel %vm261_vm3, %v696_v62, %v683_v55 }
  0x7d   : >> { %v692_v63 = vrot.slane %v672_v60, 1  ;;  %s463_s13 = sadd.s32 %s2316_s29, %s462_s19  ;;  %v698_v2 = vsel %vm263_vm4, %v697_v1, %v686_v56  ;;  %s471_s2 = sadd.s32 128, %s1823_s24 }
  0x7e   : >> { %s465_s12 = sadd.s32 128, %s2317_s0  ;;  %s464_s14 = sld [smem:[#allocation5 + %s463_s13]]  ;;  %v699_v3 = vsel %vm265_vm5, %v698_v2, %v689_v61 }
  0x7f   : >> { %s466_s9 = sadd.s32 %s2318_s1, %s465_s12  ;;  %v700_v4 = vsel %vm267_vm6, %v699_v3, %v692_v63  ;;  %s472_s30 = sadd.s32 %s1866_s17, %s471_s2 }
  0x80   : >> { %s467_s11 = sld [smem:[#allocation5 + %s466_s9]]  ;;  %v701_v5 = vmul.f32 %v700_v4, %v1835_v40  ;;  %s474_s26 = sadd.s32 128, %s1831_s7 }
  0x81   : >> { %s468_s25 = sadd.s32 128, %s2319_s10  ;;  %s473_s19 = sld [smem:[#allocation5 + %s472_s30]] }
  0x82   : >> { %s469_s20 = sadd.s32 %s1862_s22, %s468_s25  ;;  %s475_s12 = sadd.s32 %s1868_s6, %s474_s26  ;;  %702 = vadd.xlane.f32.xlu2 %v701_v5 }
  0x83   : >> { %s470_s21 = sld [smem:[#allocation5 + %s469_s20]]  ;;  %s477_s8 = sadd.s32 128, %s1839_s3 }
  0x84   : >> { %s476_s13 = sld [smem:[#allocation5 + %s475_s12]]  ;;  %s478_s4 = sadd.s32 %s1870_s15, %s477_s8 }
  0x85   : >> { %s480_s9 = sadd.s32 128, %s1844_s28  ;;  %s479_s23 = sld [smem:[#allocation5 + %s478_s4]] }
  0x86   : >> { %s481_s25 = sadd.s32 %s1872_s16, %s480_s9  ;;  %s483_s22 = scalar_lea.vmem [#allocation9], %s1898_s27 }
  0x87   : >> { %s482_s29 = sld [smem:[#allocation5 + %s481_s25]]  ;;  %v484_v6 = vld [vmem:[%s483_s22] sm:$0x1]  ;;  %s485_s20 = scalar_lea.vmem [#allocation9], %s464_s14 }
  0x88   : >> { %s2320_s2 = sld [smem:[#allocation38_spill]]  ;;  %v486_v7 = vld [vmem:[%s485_s20] sm:$0x1]  ;;  %s487_s30 = scalar_lea.vmem [#allocation9], %s467_s11 }
  0x89   : >> { %v488_v8 = vld [vmem:[%s487_s30] sm:$0x1]  ;;  %s2321_s26 = sld [smem:[#allocation36_spill]]  ;;  %s489_s3 = scalar_lea.vmem [#allocation9], %s470_s21  ;;  %v500_v11 = vrot.slane %v486_v7, 7 }
  0x8a   : >> { %s2322_s12 = sld [smem:[#allocation29_spill]]  ;;  %v490_v9 = vld [vmem:[%s489_s3] sm:$0x1]  ;;  %s491_s8 = scalar_lea.vmem [#allocation9], %s473_s19  ;;  %v503_v13 = vrot.slane %v488_v8, 6 }
  0x8b   : >> { %v492_v10 = vld [vmem:[%s491_s8] sm:$0x1]  ;;  %s359_s4 = sadd.s32 %s2318_s1, %s2317_s0  ;;  %s493_s9 = scalar_lea.vmem [#allocation9], %s476_s13  ;;  %v506_v14 = vrot.slane %v490_v9, 5  ;;  %v520_v17 = vsel %vm255_vm0, %v484_v6, %v500_v11 }
  0x8c   : >> { %v494_v12 = vld [vmem:[%s493_s9] sm:$0x1]  ;;  %v509_v15 = vrot.slane %v492_v10, 4  ;;  %s2323_s22 = sadd.s32 %s2314_s18, %s2313_s5  ;;  %s495_s21 = scalar_lea.vmem [#allocation9], %s479_s23  ;;  %v521_v19 = vsel %vm257_vm1, %v520_v17, %v503_v13 }
  0x8d   : >> { %s1926_s27 = sld [smem:[#allocation5 + %s2323_s22]]  ;;  %v512_v16 = vrot.slane %v494_v12, 3  ;;  %v496_v18 = vld [vmem:[%s495_s21] sm:$0x1]  ;;  %s497_s25 = scalar_lea.vmem [#allocation9], %s482_s29  ;;  %v522_v22 = vsel %vm259_vm2, %v521_v19, %v506_v14 }
  0x8e   : >> { %s366_s14 = sadd.s32 %s2320_s2, %s2319_s10  ;;  %s2325_s19 = sld [smem:[#allocation34_spill]]  ;;  %v498_v20 = vld [vmem:[%s497_s25] sm:$0x1]  ;;  %v515_v21 = vrot.slane %v496_v18, 2  ;;  %v523_v24 = vsel %vm261_vm3, %v522_v22, %v509_v15 }
  0x8f   : >> { %s360_s13 = sld [smem:[#allocation5 + %s359_s4]]  ;;  %s373_s30 = sadd.s32 %s1866_s17, %s1823_s24  ;;  %v518_v23 = vrot.slane %v498_v20, 1  ;;  %v524_v25 = vsel %vm263_vm4, %v523_v24, %v512_v16 }
  0x90   : >> { %s2324_s3 = sadd.s32 %s2321_s26, %s2322_s12  ;;  %s367_s20 = sld [smem:[#allocation5 + %s366_s14]]  ;;  %v525_v26 = vsel %vm265_vm5, %v524_v25, %v515_v21 }
  0x91   : >> { %s353_s11 = sld [smem:[#allocation5 + %s2324_s3]]  ;;  %s380_s8 = sadd.s32 %s1868_s6, %s1831_s7  ;;  %v526_v27 = vsel %vm267_vm6, %v525_v26, %v518_v23 }
  0x92   : >> { %s374_s23 = sld [smem:[#allocation5 + %s373_s30]]  ;;  %s394_s22 = sadd.s32 %s1872_s16, %s1844_s28  ;;  %v527_v28 = vmul.f32 %v526_v27, %v1835_v40 }
  0x93   : >> { %s381_s9 = sld [smem:[#allocation5 + %s380_s8]]  ;;  %s396_s14 = scalar_lea.vmem [#allocation9], %s1926_s27 }
  0x94   : >> { %s387_s4 = sadd.s32 %s1870_s15, %s2325_s19  ;;  %s1948_s3 = sld [smem:[#allocation5 + %s394_s22]]  ;;  %v397_v29 = vld [vmem:[%s396_s14] sm:$0x1]  ;;  %528 = vadd.xlane.f32.xlu1 %v527_v28 }
  0x95   : >> { %s388_s29 = sld [smem:[#allocation5 + %s387_s4]]  ;;  %s400_s25 = scalar_lea.vmem [#allocation9], %s360_s13 }
  0x96   : >> { %v401_v31 = vld [vmem:[%s400_s25] sm:$0x1]  ;;  %s720_s30 = sadd.s32 512, %s2313_s5  ;;  %s402_s8 = scalar_lea.vmem [#allocation9], %s367_s20 }
  0x97   : >> { %s398_s21 = scalar_lea.vmem [#allocation9], %s353_s11  ;;  %v403_v32 = vld [vmem:[%s402_s8] sm:$0x1]  ;;  %v416_v34 = vrot.slane %v401_v31, 6  ;;  %s721_s4 = sadd.s32 %s2314_s18, %s720_s30 }
  0x98   : >> { %v399_v30 = vld [vmem:[%s398_s21] sm:$0x1]  ;;  %s404_s22 = scalar_lea.vmem [#allocation9], %s374_s23  ;;  %v419_v36 = vrot.slane %v403_v32, 5  ;;  %s1954_s16 = sld [smem:[#allocation5 + %s721_s4]] }
  0x99   : >> { %v413_v33 = vrot.slane %v399_v30, 7  ;;  %v405_v35 = vld [vmem:[%s404_s22] sm:$0x1]  ;;  %s406_s27 = scalar_lea.vmem [#allocation9], %s381_s9  ;;  %s723_s11 = sadd.s32 512, %s2322_s12 }
  0x9a   : >> { %v407_v37 = vld [vmem:[%s406_s27] sm:$0x1]  ;;  %v422_v38 = vrot.slane %v405_v35, 4  ;;  %s724_s20 = sadd.s32 %s2321_s26, %s723_s11  ;;  %s410_s23 = scalar_lea.vmem [#allocation9], %s1948_s3 }
  0x9b   : >> { %v433_v39 = vsel %vm255_vm0, %v397_v29, %v413_v33  ;;  %s408_s13 = scalar_lea.vmem [#allocation9], %s388_s29  ;;  %v425_v42 = vrot.slane %v407_v37, 3  ;;  %v411_v44 = vld [vmem:[%s410_s23] sm:$0x1]  ;;  %s1962_s9 = sld [smem:[#allocation5 + %s724_s20]] }
  0x9c   : >> { %v409_v41 = vld [vmem:[%s408_s13] sm:$0x1]  ;;  %v434_v43 = vsel %vm257_vm1, %v433_v39, %v416_v34  ;;  %s726_s14 = sadd.s32 512, %s2317_s0  ;;  %v431_v47 = vrot.slane %v411_v44, 1  ;;  %s729_s21 = sadd.s32 512, %s2319_s10 }
  0x9d   : >> { %v428_v45 = vrot.slane %v409_v41, 2  ;;  %v435_v46 = vsel %vm259_vm2, %v434_v43, %v419_v36  ;;  %s727_s29 = sadd.s32 %s2318_s1, %s726_s14  ;;  %s730_s25 = sadd.s32 %s2320_s2, %s729_s21 }
  0x9e   : >> { %v436_v48 = vsel %vm261_vm3, %v435_v46, %v422_v38  ;;  %s728_s3 = sld [smem:[#allocation5 + %s727_s29]]  ;;  %s732_s4 = sadd.s32 512, %s1823_s24 }
  0x9f   : >> { %v437_v49 = vsel %vm263_vm4, %v436_v48, %v425_v42  ;;  %s2326_s30 = sld [smem:[#allocation39_spill]]  ;;  %s733_s22 = sadd.s32 %s1866_s17, %s732_s4 }
  0xa0   : >> { %v438_v50 = vsel %vm265_vm5, %v437_v49, %v428_v45  ;;  %s731_s8 = sld [smem:[#allocation5 + %s730_s25]]  ;;  %s735_s27 = sadd.s32 512, %s1831_s7 }
  0xa1   : >> { %v439_v51 = vsel %vm267_vm6, %v438_v50, %v431_v47  ;;  %s734_s11 = sld [smem:[#allocation5 + %s733_s22]]  ;;  %s736_s13 = sadd.s32 %s1868_s6, %s735_s27 }
  0xa2   : >> { %v440_v52 = vmul.f32 %v439_v51, %v1835_v40  ;;  %s737_s20 = sld [smem:[#allocation5 + %s736_s13]]  ;;  %s738_s23 = sadd.s32 512, %s2325_s19 }
  0xa3   : >> { %s739_s14 = sadd.s32 %s1870_s15, %s738_s23  ;;  %s741_s29 = sadd.s32 512, %s1844_s28 }
  0xa4   : >> { %441 = vadd.xlane.f32.xlu0 %v440_v52  ;;  %s740_s21 = sld [smem:[#allocation5 + %s739_s14]]  ;;  %s744_s25 = scalar_lea.vmem [#allocation9], %s1954_s16 }
  0xa5   : >> { %s742_s2 = sadd.s32 %s2326_s30, %s741_s29  ;;  %v745_v53 = vld [vmem:[%s744_s25] sm:$0x1]  ;;  %s746_s24 = scalar_lea.vmem [#allocation9], %s1962_s9 }
  0xa6   : >> { %s743_s10 = sld [smem:[#allocation5 + %s742_s2]]  ;;  %v747_v54 = vld [vmem:[%s746_s24] sm:$0x1]  ;;  %s748_s4 = scalar_lea.vmem [#allocation9], %s728_s3 }
  0xa7   : >> { %v749_v55 = vld [vmem:[%s748_s4] sm:$0x1]  ;;  %s750_s7 = scalar_lea.vmem [#allocation9], %s731_s8  ;;  %s752_s22 = scalar_lea.vmem [#allocation9], %s734_s11  ;;  %v761_v58 = vrot.slane %v747_v54, 7 }
  0xa8   : >> { %v751_v56 = vld [vmem:[%s750_s7] sm:$0x1]  ;;  %s754_s27 = scalar_lea.vmem [#allocation9], %s737_s20  ;;  %v764_v60 = vrot.slane %v749_v55, 6  ;;  %s546_s16 = sadd.s32 256, %s2313_s5 }
  0xa9   : >> { %v753_v57 = vld [vmem:[%s752_s22] sm:$0x1]  ;;  %v767_v61 = vrot.slane %v751_v56, 5  ;;  %v781_v1 = vsel %vm255_vm0, %v745_v53, %v761_v58  ;;  %s547_s24 = sadd.s32 %s2314_s18, %s546_s16  ;;  %s2327_s9 = sld [smem:[#allocation31_spill]] }
  0xaa   : >> { %v755_v59 = vld [vmem:[%s754_s27] sm:$0x1]  ;;  %v770_v62 = vrot.slane %v753_v57, 4  ;;  %s756_s2 = scalar_lea.vmem [#allocation9], %s740_s21  ;;  %v782_v3 = vsel %vm257_vm1, %v781_v1, %v764_v60  ;;  %s1987_s7 = sld [smem:[#allocation5 + %s547_s24]] }
  0xab   : >> { %v773_v63 = vrot.slane %v755_v59, 3  ;;  %v757_v2 = vld [vmem:[%s756_s2] sm:$0x1]  ;;  %s2328_s3 = sld [smem:[#allocation38_spill]]  ;;  %v783_v6 = vsel %vm259_vm2, %v782_v3, %v767_v61  ;;  %s549_s13 = sadd.s32 256, %s2322_s12 }
  0xac   : >> { %s758_s8 = scalar_lea.vmem [#allocation9], %s743_s10  ;;  %v776_v5 = vrot.slane %v757_v2, 2  ;;  %s2329_s11 = sld [smem:[#allocation32_spill]]  ;;  %v784_v8 = vsel %vm261_vm3, %v783_v6, %v770_v62 }
  0xad   : >> { %v759_v4 = vld [vmem:[%s758_s8] sm:$0x1]  ;;  %s552_s20 = sadd.s32 256, %s2317_s0  ;;  %s2330_s23 = sld [smem:[#allocation33_spill]]  ;;  %v785_v9 = vsel %vm263_vm4, %v784_v8, %v773_v63 }
  0xae   : >> { %v779_v7 = vrot.slane %v759_v4, 1  ;;  %s550_s14 = sadd.s32 %s2321_s26, %s549_s13  ;;  %s553_s29 = sadd.s32 %s2318_s1, %s552_s20  ;;  %v786_v10 = vsel %vm265_vm5, %v785_v9, %v776_v5 }
  0xaf   : >> { %s551_s21 = sld [smem:[#allocation5 + %s550_s14]]  ;;  %s555_s10 = sadd.s32 256, %s2327_s9 }
  0xb0   : >> { %s554_s25 = sld [smem:[#allocation5 + %s553_s29]]  ;;  %v787_v11 = vsel %vm267_vm6, %v786_v10, %v779_v7  ;;  %s564_s20 = sadd.s32 256, %s2325_s19 }
  0xb1   : >> { %s556_s4 = sadd.s32 %s2328_s3, %s555_s10  ;;  %v788_v12 = vmul.f32 %v787_v11, %v1835_v40  ;;  %s565_s14 = sadd.s32 %s1870_s15, %s564_s20 }
  0xb2   : >> { %s557_s22 = sld [smem:[#allocation5 + %s556_s4]]  ;;  %s558_s27 = sadd.s32 256, %s2329_s11 }
  0xb3   : >> { %s559_s16 = sadd.s32 %s1866_s17, %s558_s27  ;;  %s561_s24 = sadd.s32 256, %s2330_s23  ;;  %789 = vadd.xlane.f32.xlu2 %v788_v12 }
  0xb4   : >> { %s560_s2 = sld [smem:[#allocation5 + %s559_s16]]  ;;  %s562_s8 = sadd.s32 %s1868_s6, %s561_s24 }
  0xb5   : >> { %s563_s13 = sld [smem:[#allocation5 + %s562_s8]]  ;;  %s567_s9 = sadd.s32 256, %s1844_s28 }
  0xb6   : >> { %s566_s1 = sld [smem:[#allocation5 + %s565_s14]]  ;;  %s568_s29 = sadd.s32 %s2326_s30, %s567_s9 }
  0xb7   : >> { %s569_s26 = sld [smem:[#allocation5 + %s568_s29]]  ;;  %s570_s10 = scalar_lea.vmem [#allocation9], %s1987_s7 }
  0xb8   : >> { %v571_v13 = vld [vmem:[%s570_s10] sm:$0x1]  ;;  %s572_s3 = scalar_lea.vmem [#allocation9], %s551_s21  ;;  %s574_s4 = scalar_lea.vmem [#allocation9], %s554_s25 }
  0xb9   : >> { %v573_v14 = vld [vmem:[%s572_s3] sm:$0x1]  ;;  %s576_s27 = scalar_lea.vmem [#allocation9], %s557_s22  ;;  %s807_s9 = sadd.s32 640, %s2313_s5 }
  0xba   : >> { %v575_v15 = vld [vmem:[%s574_s4] sm:$0x1]  ;;  %s578_s16 = scalar_lea.vmem [#allocation9], %s560_s2  ;;  %v587_v18 = vrot.slane %v573_v14, 7  ;;  %s2331_s7 = sld [smem:[#allocation36_spill]] }
  0xbb   : >> { %v577_v16 = vld [vmem:[%s576_s27] sm:$0x1]  ;;  %s580_s24 = scalar_lea.vmem [#allocation9], %s563_s13  ;;  %v590_v20 = vrot.slane %v575_v15, 6  ;;  %s2332_s3 = sld [smem:[#allocation37_spill]] }
  0xbc   : >> { %v579_v17 = vld [vmem:[%s578_s16] sm:$0x1]  ;;  %v593_v21 = vrot.slane %v577_v16, 5  ;;  %v607_v24 = vsel %vm255_vm0, %v571_v13, %v587_v18  ;;  %s808_s21 = sadd.s32 %s2314_s18, %s807_s9  ;;  %s582_s25 = scalar_lea.vmem [#allocation9], %s566_s1 }
  0xbd   : >> { %v581_v19 = vld [vmem:[%s580_s24] sm:$0x1]  ;;  %v596_v22 = vrot.slane %v579_v17, 4  ;;  %s2333_s22 = sld [smem:[#allocation31_spill]]  ;;  %v608_v26 = vsel %vm257_vm1, %v607_v24, %v590_v20  ;;  %s584_s13 = scalar_lea.vmem [#allocation9], %s569_s26 }
  0xbe   : >> { %v599_v23 = vrot.slane %v581_v19, 3  ;;  %v583_v25 = vld [vmem:[%s582_s25] sm:$0x1]  ;;  %s2014_s2 = sld [smem:[#allocation5 + %s808_s21]]  ;;  %v609_v29 = vsel %vm259_vm2, %v608_v26, %v593_v21  ;;  %s810_s20 = sadd.s32 640, %s2322_s12 }
  0xbf   : >> { %s2334_s8 = sld [smem:[#allocation38_spill]]  ;;  %v585_v27 = vld [vmem:[%s584_s13] sm:$0x1]  ;;  %v602_v28 = vrot.slane %v583_v25, 2  ;;  %s813_s14 = sadd.s32 640, %s2317_s0  ;;  %v610_v31 = vsel %vm261_vm3, %v609_v29, %v596_v22 }
  0xc0   : >> { %v605_v30 = vrot.slane %v585_v27, 1  ;;  %s811_s1 = sadd.s32 %s2331_s7, %s810_s20  ;;  %v611_v32 = vsel %vm263_vm4, %v610_v31, %v599_v23  ;;  %s819_s24 = sadd.s32 640, %s2329_s11 }
  0xc1   : >> { %s814_s29 = sadd.s32 %s2332_s3, %s813_s14  ;;  %s812_s10 = sld [smem:[#allocation5 + %s811_s1]]  ;;  %v612_v33 = vsel %vm265_vm5, %v611_v32, %v602_v28 }
  0xc2   : >> { %s815_s4 = sld [smem:[#allocation5 + %s814_s29]]  ;;  %v613_v34 = vsel %vm267_vm6, %v612_v33, %v605_v30  ;;  %s820_s9 = sadd.s32 %s1866_s17, %s819_s24 }
  0xc3   : >> { %s816_s26 = sadd.s32 640, %s2333_s22  ;;  %v614_v35 = vmul.f32 %v613_v34, %v1835_v40  ;;  %s822_s21 = sadd.s32 640, %s2330_s23 }
  0xc4   : >> { %s821_s25 = sld [smem:[#allocation5 + %s820_s9]]  ;;  %s823_s13 = sadd.s32 %s1868_s6, %s822_s21 }
  0xc5   : >> { %s817_s27 = sadd.s32 %s2334_s8, %s816_s26  ;;  %615 = vadd.xlane.f32.xlu1 %v614_v35  ;;  %s824_s20 = sld [smem:[#allocation5 + %s823_s13]] }
  0xc6   : >> { %s818_s16 = sld [smem:[#allocation5 + %s817_s27]]  ;;  %s825_s14 = sadd.s32 640, %s2325_s19 }
  0xc7   : >> { %s826_s1 = sadd.s32 %s1870_s15, %s825_s14  ;;  %s828_s22 = sadd.s32 640, %s1844_s28 }
  0xc8   : >> { %s827_s3 = sld [smem:[#allocation5 + %s826_s1]]  ;;  %s829_s29 = sadd.s32 %s2326_s30, %s828_s22 }
  0xc9   : >> { %s830_s7 = sld [smem:[#allocation5 + %s829_s29]]  ;;  %s831_s26 = scalar_lea.vmem [#allocation9], %s2014_s2 }
  0xca   : >> { %v832_v36 = vld [vmem:[%s831_s26] sm:$0x1]  ;;  %s833_s8 = scalar_lea.vmem [#allocation9], %s812_s10  ;;  %s835_s27 = scalar_lea.vmem [#allocation9], %s815_s4 }
  0xcb   : >> { %v834_v37 = vld [vmem:[%s833_s8] sm:$0x1]  ;;  %s839_s9 = scalar_lea.vmem [#allocation9], %s821_s25  ;;  %s841_s21 = scalar_lea.vmem [#allocation9], %s824_s20 }
  0xcc   : >> { %v836_v38 = vld [vmem:[%s835_s27] sm:$0x1]  ;;  %s837_s24 = scalar_lea.vmem [#allocation9], %s818_s16  ;;  %v848_v42 = vrot.slane %v834_v37, 7  ;;  %s981_s22 = sadd.s32 896, %s2313_s5 }
  0xcd   : >> { %v838_v39 = vld [vmem:[%s837_s24] sm:$0x1]  ;;  %v851_v44 = vrot.slane %v836_v38, 6  ;;  %s2335_s2 = sld [smem:[#allocation36_spill]]  ;;  %s982_s10 = sadd.s32 %s2314_s18, %s981_s22 }
  0xce   : >> { %v840_v41 = vld [vmem:[%s839_s9] sm:$0x1]  ;;  %v854_v45 = vrot.slane %v838_v39, 5  ;;  %s2336_s8 = sld [smem:[#allocation37_spill]]  ;;  %v868_v48 = vsel %vm255_vm0, %v832_v36, %v848_v42  ;;  %s843_s4 = scalar_lea.vmem [#allocation9], %s827_s3 }
  0xcf   : >> { %v842_v43 = vld [vmem:[%s841_s21] sm:$0x1]  ;;  %v857_v46 = vrot.slane %v840_v41, 4  ;;  %s2337_s16 = sld [smem:[#allocation31_spill]]  ;;  %v869_v50 = vsel %vm257_vm1, %v868_v48, %v851_v44  ;;  %s845_s20 = scalar_lea.vmem [#allocation9], %s830_s7 }
  0xd0   : >> { %v860_v47 = vrot.slane %v842_v43, 3  ;;  %v844_v49 = vld [vmem:[%s843_s4] sm:$0x1]  ;;  %s2041_s25 = sld [smem:[#allocation5 + %s982_s10]]  ;;  %v870_v53 = vsel %vm259_vm2, %v869_v50, %v854_v45  ;;  %s984_s14 = sadd.s32 896, %s2322_s12 }
  0xd1   : >> { %s2338_s13 = sld [smem:[#allocation38_spill]]  ;;  %v846_v51 = vld [vmem:[%s845_s20] sm:$0x1]  ;;  %v863_v52 = vrot.slane %v844_v49, 2  ;;  %s987_s1 = sadd.s32 896, %s2317_s0  ;;  %v871_v55 = vsel %vm261_vm3, %v870_v53, %v857_v46 }
  0xd2   : >> { %v866_v54 = vrot.slane %v846_v51, 1  ;;  %v872_v56 = vsel %vm263_vm4, %v871_v55, %v860_v47  ;;  %s993_s21 = sadd.s32 896, %s2329_s11  ;;  %s996_s10 = sadd.s32 896, %s2330_s23 }
  0xd3   : >> { %s985_s3 = sadd.s32 %s2335_s2, %s984_s14  ;;  %v873_v57 = vsel %vm265_vm5, %v872_v56, %v863_v52  ;;  %s994_s22 = sadd.s32 %s1866_s17, %s993_s21 }
  0xd4   : >> { %s988_s29 = sadd.s32 %s2336_s8, %s987_s1  ;;  %s986_s26 = sld [smem:[#allocation5 + %s985_s3]]  ;;  %v874_v58 = vsel %vm267_vm6, %v873_v57, %v866_v54 }
  0xd5   : >> { %s990_s7 = sadd.s32 896, %s2337_s16  ;;  %s989_s27 = sld [smem:[#allocation5 + %s988_s29]]  ;;  %v875_v59 = vmul.f32 %v874_v58, %v1835_v40  ;;  %v2099_v44 = vpop.xlane.xlu0 %322 }
  0xd6   : >> { %s995_s4 = sld [smem:[#allocation5 + %s994_s22]]  ;;  %s997_s20 = sadd.s32 %s1868_s6, %s996_s10  ;;  %v324_v47 = vsub.f32 0.0, %v2099_v44 }
  0xd7   : >> { %s991_s24 = sadd.s32 %s2338_s13, %s990_s7  ;;  %876 = vadd.xlane.f32.xlu0 %v875_v59  ;;  %s998_s14 = sld [smem:[#allocation5 + %s997_s20]] }
  0xd8   : >> { %s992_s9 = sld [smem:[#allocation5 + %s991_s24]]  ;;  %s999_s1 = sadd.s32 896, %s2325_s19  ;;  %v326_v49 = vand.u32 2147483647, %v324_v47 }
  0xd9   : >> { %s1000_s3 = sadd.s32 %s1870_s15, %s999_s1  ;;  %s1002_s16 = sadd.s32 896, %s1844_s28 }
  0xda   : >> { %s1001_s8 = sld [smem:[#allocation5 + %s1000_s3]]  ;;  %s1003_s29 = sadd.s32 %s2326_s30, %s1002_s16 }
  0xdb   : >> { %s1004_s2 = sld [smem:[#allocation5 + %s1003_s29]]  ;;  %s1005_s7 = scalar_lea.vmem [#allocation9], %s2041_s25 }
  0xdc   : >> { %v1006_v60 = vld [vmem:[%s1005_s7] sm:$0x1]  ;;  %s1007_s13 = scalar_lea.vmem [#allocation9], %s986_s26  ;;  %s1009_s24 = scalar_lea.vmem [#allocation9], %s989_s27 }
  0xdd   : >> { %v1008_v61 = vld [vmem:[%s1007_s13] sm:$0x1]  ;;  %s1013_s22 = scalar_lea.vmem [#allocation9], %s995_s4  ;;  %s1015_s10 = scalar_lea.vmem [#allocation9], %s998_s14 }
  0xde   : >> { %v1010_v62 = vld [vmem:[%s1009_s24] sm:$0x1]  ;;  %s1011_s21 = scalar_lea.vmem [#allocation9], %s992_s9  ;;  %v1022_v2 = vrot.slane %v1008_v61, 7  ;;  %s894_s16 = sadd.s32 768, %s2313_s5 }
  0xdf   : >> { %v1012_v63 = vld [vmem:[%s1011_s21] sm:$0x1]  ;;  %v1025_v4 = vrot.slane %v1010_v62, 6  ;;  %s2339_s25 = sld [smem:[#allocation36_spill]]  ;;  %s895_s26 = sadd.s32 %s2314_s18, %s894_s16 }
  0xe0   : >> { %v1014_v1 = vld [vmem:[%s1013_s22] sm:$0x1]  ;;  %v1028_v5 = vrot.slane %v1012_v63, 5  ;;  %s2340_s13 = sld [smem:[#allocation37_spill]]  ;;  %v1042_v8 = vsel %vm255_vm0, %v1006_v60, %v1022_v2  ;;  %s1017_s27 = scalar_lea.vmem [#allocation9], %s1001_s8 }
  0xe1   : >> { %v1016_v3 = vld [vmem:[%s1015_s10] sm:$0x1]  ;;  %v1031_v6 = vrot.slane %v1014_v1, 4  ;;  %s2341_s9 = sld [smem:[#allocation31_spill]]  ;;  %v1043_v10 = vsel %vm257_vm1, %v1042_v8, %v1025_v4  ;;  %s1019_s14 = scalar_lea.vmem [#allocation9], %s1004_s2 }
  0xe2   : >> { %v1034_v7 = vrot.slane %v1016_v3, 3  ;;  %v1018_v9 = vld [vmem:[%s1017_s27] sm:$0x1]  ;;  %s2068_s4 = sld [smem:[#allocation5 + %s895_s26]]  ;;  %v1044_v13 = vsel %vm259_vm2, %v1043_v10, %v1028_v5  ;;  %s897_s5 = sadd.s32 768, %s2322_s12 }
  0xe3   : >> { %s2342_s20 = sld [smem:[#allocation38_spill]]  ;;  %v1020_v11 = vld [vmem:[%s1019_s14] sm:$0x1]  ;;  %v1037_v12 = vrot.slane %v1018_v9, 2  ;;  %s900_s1 = sadd.s32 768, %s2317_s0  ;;  %v1045_v15 = vsel %vm261_vm3, %v1044_v13, %v1031_v6 }
  0xe4   : >> { %v1040_v14 = vrot.slane %v1020_v11, 1  ;;  %v1046_v16 = vsel %vm263_vm4, %v1045_v15, %v1034_v7  ;;  %s906_s7 = sadd.s32 768, %s2329_s11  ;;  %s909_s21 = sadd.s32 768, %s2330_s23 }
  0xe5   : >> { %s898_s18 = sadd.s32 %s2339_s25, %s897_s5  ;;  %v1047_v17 = vsel %vm265_vm5, %v1046_v16, %v1037_v12  ;;  %s907_s24 = sadd.s32 %s1866_s17, %s906_s7 }
  0xe6   : >> { %s901_s8 = sadd.s32 %s2340_s13, %s900_s1  ;;  %s899_s3 = sld [smem:[#allocation5 + %s898_s18]]  ;;  %v1048_v18 = vsel %vm267_vm6, %v1047_v17, %v1040_v14 }
  0xe7   : >> { %s903_s2 = sadd.s32 768, %s2341_s9  ;;  %s902_s29 = sld [smem:[#allocation5 + %s901_s8]]  ;;  %v1049_v19 = vmul.f32 %v1048_v18, %v1835_v40 }
  0xe8   : >> { %s908_s22 = sld [smem:[#allocation5 + %s907_s24]]  ;;  %s910_s10 = sadd.s32 %s1868_s6, %s909_s21 }
  0xe9   : >> { %s904_s12 = sadd.s32 %s2342_s20, %s903_s2  ;;  %1050 = vadd.xlane.f32.xlu2 %v1049_v19  ;;  %s911_s16 = sld [smem:[#allocation5 + %s910_s10]] }
  0xea   : >> { %s905_s0 = sld [smem:[#allocation5 + %s904_s12]]  ;;  %s912_s25 = sadd.s32 768, %s2325_s19 }
  0xeb   : >> { %s913_s13 = sadd.s32 %s1870_s15, %s912_s25  ;;  %s915_s26 = sadd.s32 768, %s1844_s28 }
  0xec   : >> { %s914_s27 = sld [smem:[#allocation5 + %s913_s13]]  ;;  %s916_s9 = sadd.s32 %s2326_s30, %s915_s26 }
  0xed   : >> { %s917_s14 = sld [smem:[#allocation5 + %s916_s9]]  ;;  %s918_s20 = scalar_lea.vmem [#allocation9], %s2068_s4 }
  0xee   : >> { %v919_v20 = vld [vmem:[%s918_s20] sm:$0x1]  ;;  %s920_s5 = scalar_lea.vmem [#allocation9], %s899_s3  ;;  %s922_s1 = scalar_lea.vmem [#allocation9], %s902_s29 }
  0xef   : >> { %v921_v21 = vld [vmem:[%s920_s5] sm:$0x1]  ;;  %s926_s17 = scalar_lea.vmem [#allocation9], %s908_s22  ;;  %s928_s6 = scalar_lea.vmem [#allocation9], %s911_s16 }
  0xf0   : >> { %v923_v22 = vld [vmem:[%s922_s1] sm:$0x1]  ;;  %s924_s11 = scalar_lea.vmem [#allocation9], %s905_s0  ;;  %v935_v25 = vrot.slane %v921_v21, 7  ;;  %s2349_s19 = sld [smem:[#allocation27_spill]] }
  0xf1   : >> { %v925_v23 = vld [vmem:[%s924_s11] sm:$0x1]  ;;  %v938_v27 = vrot.slane %v923_v22, 6  ;;  %s2350_s30 = sld [smem:[#allocation26_spill]] }
  0xf2   : >> { %v927_v24 = vld [vmem:[%s926_s17] sm:$0x1]  ;;  %v941_v28 = vrot.slane %v925_v23, 5  ;;  %v955_v31 = vsel %vm255_vm0, %v919_v20, %v935_v25  ;;  %s930_s28 = scalar_lea.vmem [#allocation9], %s914_s27 }
  0xf3   : >> { %v929_v26 = vld [vmem:[%s928_s6] sm:$0x1]  ;;  %v944_v29 = vrot.slane %v927_v24, 4  ;;  %v956_v33 = vsel %vm257_vm1, %v955_v31, %v938_v27  ;;  %s932_s15 = scalar_lea.vmem [#allocation9], %s917_s14 }
  0xf4   : >> { %v947_v30 = vrot.slane %v929_v26, 3  ;;  %v931_v32 = vld [vmem:[%s930_s28] sm:$0x1]  ;;  %v957_v36 = vsel %vm259_vm2, %v956_v33, %v941_v28 }
  0xf5   : >> { %v933_v34 = vld [vmem:[%s932_s15] sm:$0x1]  ;;  %v950_v35 = vrot.slane %v931_v32, 2  ;;  %v958_v38 = vsel %vm261_vm3, %v957_v36, %v944_v29  ;;  %v2109_v51 = vpop.xlane.xlu2 %702 }
  0xf6   : >> { %v953_v37 = vrot.slane %v933_v34, 1  ;;  %v959_v39 = vsel %vm263_vm4, %v958_v38, %v947_v30  ;;  %v705_v59 = vand.u32 2147483647, %v2109_v51 }
  0xf7   : >> { %v960_v41 = vsel %vm265_vm5, %v959_v39, %v950_v35  ;;  %s183_s9 = sadd.s32 1, %s2350_s30  }
  0xf8   : >> { %v961_v42 = vsel %vm267_vm6, %v960_v41, %v953_v37  ;;  %v706_v1 = vsub.f32 0.0, %v705_v59  ;;  %p180_p9 = scmp.ge.s32.totalorder %s183_s9, 13  }
  0xf9   : >> { %v962_v43 = vmul.f32 %v961_v42, %v1835_v40  ;;  %v327_v40 = vsub.f32 0.0, %v326_v49  ;;  %s2352_s23 = sld [smem:[#allocation20_spill]] (%p180_p9) }
  0xfa   : >> { %v707_v6 = vmul.f32 1.442695, %v706_v1  ;;  %s2353_s4 = sld [smem:[#allocation25_spill]] (%p180_p9) }
  0xfb   : >> { %963 = vadd.xlane.f32.xlu1 %v962_v43  ;;  %v328_v56 = vmul.f32 1.442695, %v327_v40  ;;  %s2354_s18 = sld [smem:[#allocation17_spill]] (%p180_p9) }
  0xfc   : > { %s2356_s12 = sld [smem:[#allocation42_spill]] (%p180_p9) }
  0xff   : > { %s1281_s3 = sshll.u32 (%p180_p9), %s2352_s23, 3 }
 0x100   : > { %s2357_s7 = scalar_lea.vmem (%p180_p9), [#allocation11], %s2353_s4 }
 0x101   : > { %s1103_s24 = sshll.u32 (%p180_p9), %s2357_s7, 4  ;;  %s2358_s22 = smov (%p180_p9), %s2357_s7  ;;  %s1104_s24 = int_to_ptr.vmem [resolvable:$true] %s1103_s24 }
 0x102   : > { %s1101_s0 = scalar_lea.hbm (%p180_p9), %s2356_s12, %s1281_s3  ;;  %s2359_s10 = sand.u32 (%p180_p9), 1, %s2354_s18  }
 0x103   : > { %s1105_s21 = sshll.u32 (%p180_p9), %s1101_s0, 4  ;;  %s1091_s16 = scalar_lea.sflag (%p180_p9), [#allocation8], %s2359_s10  ;;  %s1106_s21 = int_to_ptr.hbm [resolvable:$true] %s1105_s21 }
 0x104   : > { %s1511_s25 = sshra.s32 (%p180_p9), %s1106_s21, 4  ;;  %s1517_s9 = scalar_lea.hbm (%p180_p9), %s2356_s12, 16  ;;  %s1512_s25 = int_to_ptr.hbm [resolvable:$true] %s1511_s25 }
 0x105   : > { %s1513_s13 = scalar_lea.hbm (%p180_p9), %s1512_s25, 8  ;;  %p1518_p13 = scmp.lt.s32.totalorder (%p180_p9), %s1512_s25, %s2356_s12 }
 0x106   : > { %p1514_p10 = scmp.ne.s32.totalorder (%p180_p9), %s1512_s25, %s1513_s13  ;;  %p1519_p0 = scmp.lt.s32.totalorder (%p180_p9), %s1517_s9, %s1513_s13 }
 0x107   : >> { %v2101_v45 = vpop.xlane.xlu1 %528 }
 0x108   : >> { %v531_v53 = vand.u32 2147483647, %v2101_v45  ;;  %p1515_p11 = pnand (%p180_p9), %p1514_p10, %p1671_p5  ;;  %p1520_p1 = por (%p180_p9), %p1519_p0, %p1518_p13 }
 0x10a   : >> { %v532_v57 = vsub.f32 0.0, %v531_v53  ;;  %p1516_p12 = pneg (%p180_p9), %p1515_p11 }
 0x10c   : >> { %v533_v60 = vmul.f32 1.442695, %v532_v57  ;;  %v325_v57 = vmax.f32 %v324_v47, 0.0  ;;  %p1521_p2 = pnand (%p180_p9), %p1520_p1, %p1516_p12 }
 0x117   : >> { %v2103_v46 = vpop.xlane.xlu0 %441 }
 0x118   : >> { %v444_v48 = vand.u32 2147483647, %v2103_v46 }
 0x11a   : >> { %v445_v50 = vsub.f32 0.0, %v444_v48 }
 0x11c   : >> { %v446_v54 = vmul.f32 1.442695, %v445_v50  ;;  %v443_v50 = vmax.f32 %v2103_v46, 0.0 }
 0x11e   : >> { %1365 = vpow2.f32 %v446_v54 }
 0x11f   : >> { %1367 = vpow2.f32 %v328_v56 }
 0x120   : >> { %1369 = vpow2.f32 %v533_v60 }
 0x124   : >> { %v1366_v63 = vpop.eup %1365 }
 0x125   : >> { %v1368_v4 = vpop.eup %1367  ;;  %v448_v5 = vadd.f32 1.0, %v1366_v63  ;;  %v451_v16 = vmul.f32 -0.5, %v1366_v63  ;;  %v454_v27 = vand.u32 2147483647, %v1366_v63 }
 0x126   : >> { %v2116_v61 = vpop.xlane.xlu2 %789  ;;  %v330_v9 = vadd.f32 1.0, %v1368_v4  ;;  %v1370_v10 = vpop.eup %1369  ;;  %v333_v19 = vmul.f32 -0.5, %v1368_v4  ;;  %v336_v26 = vand.u32 2147483647, %v1368_v4 }
 0x127   : >> { %v792_v2 = vand.u32 2147483647, %v2116_v61  ;;  %v535_v15 = vadd.f32 1.0, %v1370_v10  ;;  %v452_v23 = vadd.f32 1.0, %v451_v16  ;;  %v538_v29 = vmul.f32 -0.5, %v1370_v10 }
 0x128   : >> { %v334_v28 = vadd.f32 1.0, %v333_v19  ;;  %vm2134_vm7 = vcmp.lt.f32.partialorder %v454_v27, 0.0004427343  ;;  %vm2138_vm8 = vcmp.lt.f32.partialorder %v336_v26, 0.0004427343 }
 0x129   : >> { %v793_v7 = vsub.f32 0.0, %v792_v2  ;;  %v453_v34 = vmul.f32 %v1366_v63, %v452_v23  ;;  %v539_v42 = vadd.f32 1.0, %v538_v29  ;;  %v541_v49 = vand.u32 2147483647, %v1370_v10 }
 0x12a   : >> { %v335_v39 = vmul.f32 %v1368_v4, %v334_v28 }
 0x12b   : >> { %v794_v13 = vmul.f32 1.442695, %v793_v7  ;;  %vm2157_vm9 = vcmp.lt.f32.partialorder %v541_v49, 0.0004427343  ;;  %v1068_v49 = vlaneseq }
 0x138   : >> { %v2111_v52 = vpop.xlane.xlu1 %615 }
 0x139   : >> { %v618_v55 = vand.u32 2147483647, %v2111_v52  ;;  %v617_v19 = vmax.f32 %v2111_v52, 0.0  ;;  %v704_v52 = vmax.f32 %v2109_v51, 0.0 }
 0x13b   : >> { %v619_v58 = vsub.f32 0.0, %v618_v55 }
 0x13d   : >> { %v620_v62 = vmul.f32 1.442695, %v619_v58 }
 0x13f   : >> { %1371 = vpow2.f32 %v620_v62  ;;  %v540_v62 = vmul.f32 %v1370_v10, %v539_v42 }
 0x140   : >> { %1373 = vlog2.f32 %v448_v5 }
 0x141   : >> { %1375 = vpow2.f32 %v707_v6 }
 0x142   : >> { %1377 = vlog2.f32 %v330_v9 }
 0x143   : >> { %1379 = vpow2.f32 %v794_v13 }
 0x144   : >> { %1381 = vlog2.f32 %v535_v15 }
 0x145   : >> { %v2124_v12 = vpop.eup %1371 }
 0x146   : >> { %v622_v18 = vadd.f32 1.0, %v2124_v12  ;;  %v1374_v21 = vpop.eup %1373  ;;  %v625_v35 = vmul.f32 -0.5, %v2124_v12  ;;  %v628_v59 = vand.u32 2147483647, %v2124_v12 }
 0x147   : >> { %v2128_v22 = vpop.eup %1375  ;;  %v450_v30 = vmul.f32 0.6931472, %v1374_v21 }
 0x148   : >> { %v1378_v25 = vpop.eup %1377  ;;  %1383 = vlog2.f32 %v622_v18  ;;  %v709_v31 = vadd.f32 1.0, %v2128_v22  ;;  %v626_v56 = vadd.f32 1.0, %v625_v35  ;;  %v712_v46 = vmul.f32 -0.5, %v2128_v22 }
 0x149   : >> { %v2131_v32 = vpop.eup %1379  ;;  %v332_v33 = vmul.f32 0.6931472, %v1378_v25  ;;  %v456_v43 = vsel %vm2134_vm7, %v453_v34, %v450_v30  ;;  %vm629_vm10 = vcmp.lt.f32.partialorder %v628_v59, 0.0004427343 }
 0x14a   : >> { %v2119_v3 = vpop.xlane.xlu0 %876  ;;  %v1382_v37 = vpop.eup %1381  ;;  %v796_v40 = vadd.f32 1.0, %v2131_v32  ;;  %v457_v58 = vadd.f32 %v456_v43, %v443_v50  ;;  %v627_v5 = vmul.f32 %v2124_v12, %v626_v56  ;;  %v713_v13 = vadd.f32 1.0, %v712_v46 }
 0x14b   : >> { %v879_v8 = vand.u32 2147483647, %v2119_v3  ;;  %v338_v54 = vsel %vm2138_vm8, %v335_v39, %v332_v33  ;;  %v537_v55 = vmul.f32 0.6931472, %v1382_v37  ;;  %v802_v27 = vand.u32 2147483647, %v2131_v32 }
 0x14c   : >> { %v339_v2 = vadd.f32 %v338_v54, %v325_v57  ;;  %v791_v43 = vmax.f32 %v2116_v61, 0.0  ;;  %v878_v57 = vmax.f32 %v2119_v3, 0.0 }
 0x14d   : >> { %v880_v14 = vsub.f32 0.0, %v879_v8  ;;  %v543_v47 = vsel %vm2157_vm9, %v540_v62, %v537_v55  ;;  %v530_v8 = vmax.f32 %v2101_v45, 0.0  ;;  %vm803_vm12 = vcmp.lt.f32.partialorder %v802_v27, 0.0004427343 }
 0x14e   : >> { %v1384_v48 = vpop.eup %1383  ;;  %v458_v9 = vadd.f32 %v457_v58, %v339_v2  ;;  %v1069_v62 = vshrl.u32 %v1068_v49, 7 }
 0x14f   : >> { %v881_v20 = vmul.f32 1.442695, %v880_v14  ;;  %v624_v63 = vmul.f32 0.6931472, %v1384_v48  ;;  %v799_v14 = vmul.f32 -0.5, %v2131_v32  ;;  %v544_v18 = vadd.f32 %v543_v47, %v530_v8 }
 0x150   : > { %vm1085_vm1 = vcmp.eq.s32.totalorder (%p180_p9), %v1069_v62, 0 }
 0x151   : >> { %1385 = vpow2.f32 %v881_v20  ;;  %v630_v15 = vsel %vm629_vm10, %v627_v5, %v624_v63  ;;  %v545_v21 = vadd.f32 %v544_v18, %v458_v9  ;;  %v800_v25 = vadd.f32 1.0, %v799_v14 }
 0x152   : >> { %1387 = vlog2.f32 %v709_v31  ;;  %v631_v23 = vadd.f32 %v630_v15, %v617_v19 }
 0x153   : >> { %v801_v34 = vmul.f32 %v2131_v32, %v800_v25 }
 0x154   : >> { %v632_v31 = vadd.f32 %v631_v23, %v545_v21 }
 0x157   : >> { %v2146_v53 = vpop.eup %1385 }
 0x158   : >> { %v883_v44 = vadd.f32 1.0, %v2146_v53  ;;  %v1388_v7 = vpop.eup %1387  ;;  %v886_v26 = vmul.f32 -0.5, %v2146_v53 }
 0x159   : >> { %v711_v20 = vmul.f32 0.6931472, %v1388_v7 }
 0x15a   : >> { %v887_v35 = vadd.f32 1.0, %v886_v26 }
 0x15c   : >> { %v2122_v11 = vpop.xlane.xlu2 %1050  ;;  %v888_v51 = vmul.f32 %v2146_v53, %v887_v35 }
 0x15d   : >> { %v1053_v17 = vand.u32 2147483647, %v2122_v11  ;;  %v1052_v3 = vmax.f32 %v2122_v11, 0.0  ;;  %v1084_v11 = vand.u32 (%p180_p9), 127, %v1068_v49 }
 0x15f   : >> { %v1054_v24 = vsub.f32 0.0, %v1053_v17  ;;  %v715_v17 = vand.u32 2147483647, %v2128_v22  ;;  %vm1086_vm2 = vcmp.eq.s32.totalorder (%p180_p9), %v1084_v11, 0 }
 0x160   : > { %vm1087_vm3 = vmand (%p180_p9), %vm1085_vm1, %vm1086_vm2 }
 0x161   : >> { %v1055_v36 = vmul.f32 1.442695, %v1054_v24  ;;  %v714_v24 = vmul.f32 %v2128_v22, %v713_v13  ;;  %vm716_vm11 = vcmp.lt.f32.partialorder %v715_v17, 0.0004427343  ;;  %v889_v22 = vand.u32 2147483647, %v2146_v53 }
 0x163   : >> { %1389 = vpow2.f32 %v1055_v36  ;;  %v717_v28 = vsel %vm716_vm11, %v714_v24, %v711_v20  ;;  %vm890_vm13 = vcmp.lt.f32.partialorder %v889_v22, 0.0004427343 }
 0x164   : >> { %1391 = vlog2.f32 %v796_v40  ;;  %v718_v36 = vadd.f32 %v717_v28, %v704_v52 }
 0x165   : >> { %1393 = vlog2.f32 %v883_v44 }
 0x166   : >> { %v719_v48 = vadd.f32 %v718_v36, %v632_v31 }
 0x169   : >> { %v1390_v10 = vpop.eup %1389 }
 0x16a   : >> { %v1392_v12 = vpop.eup %1391  ;;  %v1057_v45 = vadd.f32 1.0, %v1390_v10  ;;  %v1060_v41 = vmul.f32 -0.5, %v1390_v10  ;;  %v1063_v58 = vand.u32 2147483647, %v1390_v10 }
 0x16b   : >> { %v798_v29 = vmul.f32 0.6931472, %v1392_v12  ;;  %v1394_v30 = vpop.eup %1393 }
 0x16c   : >> { %v885_v39 = vmul.f32 0.6931472, %v1394_v30  ;;  %v1061_v54 = vadd.f32 1.0, %v1060_v41  ;;  %vm1064_vm14 = vcmp.lt.f32.partialorder %v1063_v58, 0.0004427343 }
 0x16d   : >> { %v804_v38 = vsel %vm803_vm12, %v801_v34, %v798_v29 }
 0x16e   : >> { %v2153_v60 = vpop.xlane.xlu1 %963  ;;  %v805_v32 = vadd.f32 %v804_v38, %v791_v43  ;;  %v891_v40 = vsel %vm890_vm13, %v888_v51, %v885_v39  ;;  %v1062_v2 = vmul.f32 %v1390_v10, %v1061_v54 }
 0x16f   : >> { %v966_v1 = vand.u32 2147483647, %v2153_v60  ;;  %v892_v63 = vadd.f32 %v891_v40, %v878_v57  ;;  %v965_v47 = vmax.f32 %v2153_v60, 0.0 }
 0x170   : >> { %v806_v56 = vadd.f32 %v805_v32, %v719_v48 }
 0x171   : >> { %v967_v6 = vsub.f32 0.0, %v966_v1  ;;  %v1070_v1 = vstv %s2349_s19 }
 0x172   : >> { %v893_v44 = vadd.f32 %v892_v63, %v806_v56 }
 0x173   : >> { %v968_v16 = vmul.f32 1.442695, %v967_v6  ;;  %v1071_v6 = vadd.s32 %v1070_v1, %v1069_v62 }
 0x175   : >> { %1395 = vpow2.f32 %v968_v16  ;;  %vm1072_vm0 = vcmp.lt.s32.totalorder %v1071_v6, 200 }
 0x176   : >> { %1397 = vlog2.f32 %v1057_v45 }
 0x17b   : >> { %v1396_v33 = vpop.eup %1395 }
 0x17c   : >> { %v970_v37 = vadd.f32 1.0, %v1396_v33  ;;  %v973_v42 = vmul.f32 -0.5, %v1396_v33  ;;  %v1398_v50 = vpop.eup %1397  ;;  %v976_v59 = vand.u32 2147483647, %v1396_v33 }
 0x17d   : >> { %v1059_v46 = vmul.f32 0.6931472, %v1398_v50 }
 0x17e   : >> { %1399 = vlog2.f32 %v970_v37  ;;  %v974_v55 = vadd.f32 1.0, %v973_v42  ;;  %vm977_vm15 = vcmp.lt.f32.partialorder %v976_v59, 0.0004427343 }
 0x17f   : >> { %v1065_v5 = vsel %vm1064_vm14, %v1062_v2, %v1059_v46 }
 0x180   : >> { %v975_v4 = vmul.f32 %v1396_v33, %v974_v55  ;;  %v1066_v9 = vadd.f32 %v1065_v5, %v1052_v3 }
 0x184   : >> { %v1400_v61 = vpop.eup %1399 }
 0x185   : >> { %v972_v53 = vmul.f32 0.6931472, %v1400_v61 }
 0x187   : >> { %v978_v7 = vsel %vm977_vm15, %v975_v4, %v972_v53 }
 0x188   : >> { %v979_v8 = vadd.f32 %v978_v7, %v965_v47 }
 0x18a   : >> { %v980_v13 = vadd.f32 %v979_v8, %v893_v44 }
 0x18c   : >> { %v1067_v14 = vadd.f32 %v1066_v9, %v980_v13 }
 0x18e   : >> { %v1073_v15 = vsel %vm1072_vm0, %v1067_v14, 0.0 }
 0x18f   : >> { %v1074_v16 = vrot.slane %v1073_v15, 4 }
 0x191   : >> { %v1075_v10 = vadd.f32 %v1074_v16, %v1073_v15 }
 0x193   : >> { %v1076_v17 = vrot.slane %v1075_v10, 2 }
 0x195   : >> { %v1077_v18 = vadd.f32 %v1076_v17, %v1075_v10 }
 0x197   : >> { %v1078_v19 = vrot.slane %v1077_v18, 1 }
 0x199   : >> { %v1079_v20 = vadd.f32 %v1078_v19, %v1077_v18  ;;  %182 = sbr.rel (!%p180_p9) target bundleno = 47 (0x2f), region = 156 }
 0x19b   : >> { %v1080_v60 = vadd.f32 %v1581_v0, %v1079_v20  }
 0x19d   : >> { %v2351_v0 = vmov %v1080_v60 }
 0x19e   : > { %v1088_v0 = vsel %vm1087_vm3, %v1080_v60, 0.0 }
 0x19f   : > { %1089 = vst [vmem:[%s2358_s22] sm:$0xff] %v1088_v0 }
 0x1a0   : > { %1524 = shalt.err (!%p1521_p2)
}
 0x1a1   : > { %1292 = dma.vmem_to_hbm [thread:$0]  (%p1671_p5), %s1104_s24, 128, %s1106_s21, %s1091_s16  }
 0x1a2 PF: > { %s2360_s5 = sld [smem:[#allocation19_spill]] }
 0x1a3   : > { %s2361_s1 = sld [smem:[#allocation16_spill]] }
 0x1a8   : > { %p1309_p3 = scmp.ge.s32.totalorder %s2360_s5, 2 }
 0x1a9   : > { %s1117_s17 = sand.u32 1, %s2361_s1  }
 0x1aa   : > { %p1302_p4 = pnand %p1309_p3, %p1675_p6  ;;  %s1118_s6 = scalar_lea.sflag [#allocation8], %s1117_s17 }
 0x1ac   : > { %p1303_p7 = pneg %p1302_p4 }
 0x1ae   : > { %1560 = dma.done.wait (%p1303_p7), %s1118_s6, 128  }
 0x1af   : > { %1562 = vsyncadd (%p1303_p7), %s1118_s6, 4294967168  ;;  %s2363_s6 = sld [smem:[#allocation21_spill]] }
 0x1b0   : > { %s2364_s0 = sld [smem:[#allocation17_spill]] }
 0x1b1   : > { %s2365_s1 = sld [smem:[#allocation18_spill]] }
 0x1b2   : > { %s2366_s30 = sld [smem:[#allocation22_spill]] }
 0x1b5   : > { %p35_p8 = scmp.ge.s32.totalorder %s2363_s6, 4  }
 0x1b7   :  { %37 = sbr.rel (!%p35_p8) target bundleno = 16 (0x10), region = 167 }
 0x1bc   :  { %1124 = vsyncpa [#allocation7], 1 }
 0x1bd   :  { %1126 = vsyncpa [#allocation7 + $0x1], 1 }
 0x1be   :  { %1127 = vsyncpa [#allocation10], 1 }
 0x1bf   :  { %1128 = vsyncpa [#allocation8], 1 }
 0x1c0   :  { %1130 = vsyncpa [#allocation8 + $0x1], 1 }

</bundles_post_ra>
